<compile_context>
chip_gen: v7x
topology: tpu7x:2x2x1
jax: 0.10.0
libtpu: 0.0.40
codegen_flags: <defaults>
</compile_context>

<pallas_src>
import functools

import numpy as np
import jax
import jax.numpy as jnp
from jax.experimental import pallas as pl
from jax.experimental.pallas import tpu as pltpu


# ----------------------------------------------------------------------------
# helpers
# ----------------------------------------------------------------------------
def _round_up(x, m):
    return (x + m - 1) // m * m


def _pick_tile(m, cap):
    """Largest multiple-of-8 divisor of m that is <= cap and leaves >= 2 grid
    steps (keeps both v7x TensorCores busy when m is large enough)."""
    assert m % 8 == 0, f"row count {m} must be a multiple of 8"
    best, t = 8, 8
    while t <= min(cap, m):
        if m % t == 0 and (m // t >= 2 or m <= 8):
            best = t
        t += 8
    return best


def _patchify(x, ps):
    B, Cin, Hi, Wi = x.shape
    h, w = Hi // ps, Wi // ps
    p = x.reshape(B, Cin, h, ps, w, ps).transpose(0, 2, 4, 1, 3, 5)
    return p.reshape(B * h * w, Cin * ps * ps)


# ----------------------------------------------------------------------------
# Pallas kernel 1: fused backbone   patchify-stem -> 1x1 head -> 1x1 depth conv
#   One M-tile per grid step; feat and f_g stay in VMEM, weights are resident.
# ----------------------------------------------------------------------------
def _backbone_kernel(x_ref, sw_ref, sb_ref, hw_ref, hb_ref, dw_ref, db_ref,
                     fg_ref, dl_ref):
    # stem: (tm, Kp) @ (Kp, S)   bf16 MXU inputs, f32 accumulation
    feat = jnp.dot(x_ref[...], sw_ref[...],
                   preferred_element_type=jnp.float32) + sb_ref[...]
    # 1x1 head conv: (tm, S) @ (S, C)   -- feat never leaves VMEM
    fg = jnp.dot(feat.astype(jnp.bfloat16), hw_ref[...],
                 preferred_element_type=jnp.float32) + hb_ref[...]
    fg_ref[...] = fg
    # 1x1 depth conv: (tm, C) @ (C, C*D) -- f_g never leaves VMEM either
    dl_ref[...] = jnp.dot(fg.astype(jnp.bfloat16), dw_ref[...],
                          preferred_element_type=jnp.float32) + db_ref[...]


def fused_backbone(patches, stem_w, stem_b, head_w, head_b, depth_w, depth_b,
                   *, tm):
    M, K = patches.shape
    _, S = stem_w.shape
    _, C = head_w.shape
    _, CD = depth_w.shape
    return pl.pallas_call(
        _backbone_kernel,
        out_shape=(jax.ShapeDtypeStruct((M, C), jnp.float32),
                   jax.ShapeDtypeStruct((M, CD), jnp.float32)),
        grid=(M // tm,),
        in_specs=[
            pl.BlockSpec((tm, K), lambda i: (i, 0)),   # activations: tiled over M
            pl.BlockSpec((K, S), lambda i: (0, 0)),    # weights: VMEM-resident
            pl.BlockSpec((1, S), lambda i: (0, 0)),
            pl.BlockSpec((S, C), lambda i: (0, 0)),
            pl.BlockSpec((1, C), lambda i: (0, 0)),
            pl.BlockSpec((C, CD), lambda i: (0, 0)),
            pl.BlockSpec((1, CD), lambda i: (0, 0)),
        ],
        out_specs=(pl.BlockSpec((tm, C), lambda i: (i, 0)),
                   pl.BlockSpec((tm, CD), lambda i: (i, 0))),
        compiler_params=pltpu.CompilerParams(
            dimension_semantics=("parallel",),
            vmem_limit_bytes=32 * 1024 * 1024),
    )(patches, stem_w, stem_b, head_w, head_b, depth_w, depth_b)


# ----------------------------------------------------------------------------
# Pallas kernel 2: fused softmax-over-H + weighted-sum + (flipped) grid_sample
#   depth_weights laid out as (BC, H, D*W): softmax reduction over H on
#   sublanes, D*W on lanes.  f_g arrives un-broadcast as (BC, H, W) and is
#   replicated over depth on-chip with an exact 0/1 replication-matrix matmul
#   (rmat[w, d*W+w] = 1), avoiding the D x HBM materialization of the
#   broadcast.  Output is the lane-dense (bc_tile, P*P) BEV slab.
# ----------------------------------------------------------------------------
def _polar_proj_kernel(fg_ref, dwt_ref, rmat_ref, sfT_ref, o_ref):
    bct, H, W = fg_ref.shape
    DW = dwt_ref.shape[-1]

    dw = dwt_ref[...]                                   # (bct, H, D*W) f32
    m = jnp.max(dw, axis=1, keepdims=True)              # (bct, 1, D*W)
    e = jnp.exp(dw - m)                                 # (bct, H, D*W)

    # On-chip depth broadcast of f_g: (bct*H, W) @ (W, D*W) with a 0/1
    # replication matrix (exact; one nonzero per column).  Leading-dim merges
    # only (H is a multiple of 8), so the reshapes are layout-preserving.
    fgb = jnp.dot(fg_ref[...].reshape(bct * H, W), rmat_ref[...],
                  preferred_element_type=jnp.float32).reshape(bct, H, DW)

    num = jnp.sum(e * fgb, axis=1)                      # (bct, D*W)
    den = jnp.sum(e, axis=1)                            # (bct, D*W)
    # divide once, on the small (D*W)-wide tensor, via the EUP reciprocal
    polar = num * pl.reciprocal(den, approx=True)
    # fused (depth-flipped) bilinear grid_sample against the resident S.T
    o_ref[...] = jnp.dot(polar, sfT_ref[...],
                         preferred_element_type=jnp.float32)


def fused_polar_projection(fg3, dwt, rmat, sfT, *, bct):
    BC, H, W = fg3.shape
    _, _, DW = dwt.shape
    _, PP = sfT.shape
    return pl.pallas_call(
        _polar_proj_kernel,
        out_shape=jax.ShapeDtypeStruct((BC, PP), jnp.float32),
        grid=(BC // bct,),
        in_specs=[
            pl.BlockSpec((bct, H, W), lambda i: (i, 0, 0)),
            pl.BlockSpec((bct, H, DW), lambda i: (i, 0, 0)),
            pl.BlockSpec((W, DW), lambda i: (0, 0)),    # replication mat: resident
            pl.BlockSpec((DW, PP), lambda i: (0, 0)),   # S.T: VMEM-resident
        ],
        out_specs=pl.BlockSpec((bct, PP), lambda i: (i, 0)),
        compiler_params=pltpu.CompilerParams(
            dimension_semantics=("parallel",),
            vmem_limit_bytes=32 * 1024 * 1024),
    )(fg3, dwt, rmat, sfT)


# ----------------------------------------------------------------------------
# Constant sampling matrix:  bev_flat = f_polar_flat @ S.T  reproduces
#   grid_sample(flip(f_polar, depth), grid, bilinear, align_corners=False,
#   zero padding).  Built once in numpy with a scatter-add (no one_hot).
# ----------------------------------------------------------------------------
def build_projection_matrix(bev_size, D, W, fold_depth_flip=True):
    lin = np.linspace(-1.0, 1.0, bev_size)
    meshy, meshx = np.meshgrid(lin, lin, indexing="ij")
    mesh_r = np.sqrt(meshx ** 2 + meshy ** 2)
    mesh_theta = np.arctan2(meshy, meshx)
    mesh_r = -1.0 + 2.0 / (mesh_r.max() - mesh_r.min()) * (mesh_r - mesh_r.min())
    mesh_theta = -1.0 + 2.0 / (mesh_theta.max() - mesh_theta.min()) * (
        mesh_theta - mesh_theta.min())
    gx = mesh_theta.reshape(-1)          # x coordinate -> samples the W axis
    gy = mesh_r.reshape(-1)              # y coordinate -> samples the D axis
    x = ((gx + 1.0) * W - 1.0) / 2.0     # align_corners=False pixel mapping
    y = ((gy + 1.0) * D - 1.0) / 2.0
    x0, y0 = np.floor(x), np.floor(y)
    Pn = bev_size * bev_size
    rows = np.arange(Pn)
    S = np.zeros((Pn, D * W), np.float64)
    for yi, wy in ((y0, 1.0 - (y - y0)), (y0 + 1.0, y - y0)):
        for xi, wx in ((x0, 1.0 - (x - x0)), (x0 + 1.0, x - x0)):
            valid = (xi >= 0) & (xi <= W - 1) & (yi >= 0) & (yi <= D - 1)
            idx = (np.clip(yi, 0, D - 1) * W + np.clip(xi, 0, W - 1)).astype(np.int64)
            np.add.at(S, (rows, idx), np.where(valid, wy * wx, 0.0))
    if fold_depth_flip:
        S = S.reshape(Pn, D, W)[:, ::-1, :].reshape(Pn, D * W)
    return jnp.asarray(S.T, dtype=jnp.float32)


# ----------------------------------------------------------------------------
# Model
# ----------------------------------------------------------------------------
def init_params(key, cfg):
    ks = jax.random.split(key, 6)
    ps, stem = cfg["patch"], cfg["stem"]
    C, D = cfg["backbone_channels"], cfg["depth_channels"]
    return {
        "stem_w": 0.05 * jax.random.normal(ks[0], (3 * ps * ps, stem), jnp.float32),
        "stem_b": 0.05 * jax.random.normal(ks[1], (stem,), jnp.float32),
        "head_w": 0.05 * jax.random.normal(ks[2], (stem, C), jnp.float32),
        "head_b": 0.05 * jax.random.normal(ks[3], (C,), jnp.float32),
        "depth_w": 0.05 * jax.random.normal(ks[4], (C, C * D), jnp.float32),
        "depth_b": 0.05 * jax.random.normal(ks[5], (C * D,), jnp.float32),
    }


def bev_projection_forward(params, x, cfg):
    B, Cin, Hi, Wi = x.shape
    ps = cfg["patch"]
    C, D, P = cfg["backbone_channels"], cfg["depth_channels"], cfg["bev"]
    h, w = Hi // ps, Wi // ps
    M = B * h * w

    # ---- fused backbone: patchify-stem -> 1x1 head -> 1x1 depth conv --------
    patches = _patchify(x, ps)                                   # (M, 3*ps*ps)
    Kp = patches.shape[1]
    Kpad = _round_up(Kp, 128)                 # MXU/lane-friendly contraction dim
    patches = jnp.pad(patches, ((0, 0), (0, Kpad - Kp)))
    stem_w = jnp.pad(params["stem_w"], ((0, Kpad - Kp), (0, 0)))

    tm = _pick_tile(M, cap=256)
    fg, dl = fused_backbone(
        patches.astype(jnp.bfloat16),
        stem_w.astype(jnp.bfloat16), params["stem_b"].reshape(1, -1),
        params["head_w"].astype(jnp.bfloat16), params["head_b"].reshape(1, -1),
        params["depth_w"].astype(jnp.bfloat16), params["depth_b"].reshape(1, -1),
        tm=tm)                                                   # (M,C), (M,C*D)

    # ---- layout glue (plain JAX transposes only, no D x broadcast) ----------
    fg3 = fg.reshape(B, h, w, C).transpose(0, 3, 1, 2).reshape(B * C, h, w)
    # depth-conv column n = d*C + c  (matches torch .view(B, D, C, H, W))
    dwt = dl.reshape(B, h, w, D, C).transpose(0, 4, 1, 3, 2)     # (B, C, H, D, W)
    dwt = dwt.reshape(B * C, h, D * w)

    # constant matrices: depth-replication map and (flip-folded) sampler
    rmat = jnp.asarray(np.tile(np.eye(w, dtype=np.float32), (1, D)))  # (W, D*W)
    sfT = build_projection_matrix(P, D, w, fold_depth_flip=True)      # (D*W, P*P)

    # ---- fused softmax-over-H + weighted sum + flipped bilinear grid_sample -
    bct = _pick_tile(B * C, cap=128)
    bev = fused_polar_projection(fg3, dwt, rmat, sfT, bct=bct)   # (B*C, P*P)
    bev = bev.reshape(B, C, P, P)
    return jnp.rot90(bev, k=1, axes=(2, 3))


# ----------------------------------------------------------------------------
# Pure-JAX reference: same math, torch-style indexing, standard softmax.
# The MXU matmul inputs in the kernel are bf16, so the reference mirrors that
# rounding (inputs cast bf16 -> f32) to keep the tolerance tight.
# ----------------------------------------------------------------------------
def _ref_forward(params, x, cfg):
    B, Cin, Hi, Wi = x.shape
    ps = cfg["patch"]
    C, D, P = cfg["backbone_channels"], cfg["depth_channels"], cfg["bev"]
    h, w = Hi // ps, Wi // ps

    def bf(a):
        return a.astype(jnp.bfloat16).astype(jnp.float32)

    patches = _patchify(x, ps)
    feat = bf(patches) @ bf(params["stem_w"]) + params["stem_b"]
    fg = bf(feat) @ bf(params["head_w"]) + params["head_b"]
    dl = bf(fg) @ bf(params["depth_w"]) + params["depth_b"]
    dl = dl.reshape(B, h, w, D, C).transpose(0, 4, 3, 1, 2)      # (B, C, D, H, W)
    fg_map = fg.reshape(B, h, w, C).transpose(0, 3, 1, 2)        # (B, C, H, W)
    p = jax.nn.softmax(dl, axis=3)                               # softmax over H
    f_polar = jnp.sum(fg_map[:, :, None] * p, axis=3)            # (B, C, D, W)
    sT = build_projection_matrix(P, D, w, fold_depth_flip=False)
    f_flip = jnp.flip(f_polar, axis=2).reshape(B * C, D * w)
    bev = (f_flip @ sT).reshape(B, C, P, P)
    return jnp.rot90(bev, k=1, axes=(2, 3))


if __name__ == "__main__":
    cfg = {
        "backbone_channels": 32,
        "depth_channels": 8,
        "bev": 16,
        "patch": 4,
        "stem": 512,
    }
    key = jax.random.PRNGKey(0)
    kp, kx = jax.random.split(key)
    params = init_params(kp, cfg)
    x = jax.random.normal(kx, (2, 3, 32, 32), jnp.float32)

    fwd = jax.jit(functools.partial(bev_projection_forward, cfg=cfg))
    out = jax.block_until_ready(fwd(params, x))
    ref = jax.block_until_ready(_ref_forward(params, x, cfg))

    assert out.shape == (2, cfg["backbone_channels"], cfg["bev"], cfg["bev"])
    # bf16 MXU inputs + approximate EUP reciprocal (vs. exact f32 softmax in the
    # reference) give a few 1e-3 of drift; tolerance leaves margin while still
    # catching any structural / indexing error (those are O(0.1)).
    assert jnp.allclose(out, ref, atol=2e-2, rtol=2e-2), \
        float(jnp.max(jnp.abs(out - ref)))

    print("KERNEL_OK")
</pallas_src>

<mosaic_0001>
module attributes {stable_mosaic.version = 11 : i64} {
  func.func @_backbone_kernel(%arg0: i32, %arg1: memref<64x128xbf16, #tpu.memory_space<vmem>>, %arg2: memref<128x512xbf16, #tpu.memory_space<vmem>>, %arg3: memref<1x512xf32, #tpu.memory_space<vmem>>, %arg4: memref<512x32xbf16, #tpu.memory_space<vmem>>, %arg5: memref<1x32xf32, #tpu.memory_space<vmem>>, %arg6: memref<32x256xbf16, #tpu.memory_space<vmem>>, %arg7: memref<1x256xf32, #tpu.memory_space<vmem>>, %arg8: memref<64x32xf32, #tpu.memory_space<vmem>>, %arg9: memref<64x256xf32, #tpu.memory_space<vmem>>) attributes {dimension_semantics = [#tpu.dimension_semantics<parallel>], iteration_bounds = array<i64: 2>, scalar_prefetch = 0 : i64, scratch_operands = 0 : i64, tpu.core_type = #tpu.core_type<tc>, window_params = [{transform_indices = @transform_0, window_bounds = array<i64: 64, 128>}, {pipeline_mode = #tpu.pipeline_mode<synchronous>, transform_indices = @transform_1, window_bounds = array<i64: 128, 512>}, {pipeline_mode = #tpu.pipeline_mode<synchronous>, transform_indices = @transform_2, window_bounds = array<i64: 1, 512>}, {pipeline_mode = #tpu.pipeline_mode<synchronous>, transform_indices = @transform_3, window_bounds = array<i64: 512, 32>}, {pipeline_mode = #tpu.pipeline_mode<synchronous>, transform_indices = @transform_4, window_bounds = array<i64: 1, 32>}, {pipeline_mode = #tpu.pipeline_mode<synchronous>, transform_indices = @transform_5, window_bounds = array<i64: 32, 256>}, {pipeline_mode = #tpu.pipeline_mode<synchronous>, transform_indices = @transform_6, window_bounds = array<i64: 1, 256>}, {transform_indices = @transform_7, window_bounds = array<i64: 64, 32>}, {transform_indices = @transform_8, window_bounds = array<i64: 64, 256>}]} {
    %c0 = arith.constant 0 : index
    %c0_0 = arith.constant 0 : index
    %0 = vector.load %arg1[%c0, %c0_0] : memref<64x128xbf16, #tpu.memory_space<vmem>>, vector<64x128xbf16>
    %c0_1 = arith.constant 0 : index
    %c0_2 = arith.constant 0 : index
    %1 = vector.load %arg2[%c0_1, %c0_2] : memref<128x512xbf16, #tpu.memory_space<vmem>>, vector<128x512xbf16>
    %cst = arith.constant dense<0.000000e+00> : vector<64x512xf32>
    %2 = tpu.matmul %0, %1, %cst {dimension_numbers = #tpu.dot_dimension_numbers<[1], [0], [0], [1], [0, 0, 1, 1], [], []>} : vector<64x128xbf16>, vector<128x512xbf16>, vector<64x512xf32> -> vector<64x512xf32>
    %c0_3 = arith.constant 0 : index
    %c0_4 = arith.constant 0 : index
    %3 = vector.load %arg3[%c0_3, %c0_4] : memref<1x512xf32, #tpu.memory_space<vmem>>, vector<1x512xf32>
    %4 = vector.broadcast %3 : vector<1x512xf32> to vector<64x512xf32>
    %5 = arith.addf %2, %4 : vector<64x512xf32>
    %6 = arith.truncf %5 : vector<64x512xf32> to vector<64x512xbf16>
    %c0_5 = arith.constant 0 : index
    %c0_6 = arith.constant 0 : index
    %7 = vector.load %arg4[%c0_5, %c0_6] : memref<512x32xbf16, #tpu.memory_space<vmem>>, vector<512x32xbf16>
    %cst_7 = arith.constant dense<0.000000e+00> : vector<64x32xf32>
    %8 = tpu.matmul %6, %7, %cst_7 {dimension_numbers = #tpu.dot_dimension_numbers<[1], [0], [0], [1], [0, 0, 1, 1], [], []>} : vector<64x512xbf16>, vector<512x32xbf16>, vector<64x32xf32> -> vector<64x32xf32>
    %c0_8 = arith.constant 0 : index
    %c0_9 = arith.constant 0 : index
    %9 = vector.load %arg5[%c0_8, %c0_9] : memref<1x32xf32, #tpu.memory_space<vmem>>, vector<1x32xf32>
    %10 = vector.broadcast %9 : vector<1x32xf32> to vector<64x32xf32>
    %11 = arith.addf %8, %10 : vector<64x32xf32>
    %c0_10 = arith.constant 0 : index
    %c0_11 = arith.constant 0 : index
    %12 = vector.load %arg8[%c0_10, %c0_11] : memref<64x32xf32, #tpu.memory_space<vmem>>, vector<64x32xf32>
    tpu.vector_store %arg8[%c0_10, %c0_11], %11 {strides = array<i32>} : memref<64x32xf32, #tpu.memory_space<vmem>>, vector<64x32xf32>,
    %13 = arith.truncf %11 : vector<64x32xf32> to vector<64x32xbf16>
    %c0_12 = arith.constant 0 : index
    %c0_13 = arith.constant 0 : index
    %14 = vector.load %arg6[%c0_12, %c0_13] : memref<32x256xbf16, #tpu.memory_space<vmem>>, vector<32x256xbf16>
    %cst_14 = arith.constant dense<0.000000e+00> : vector<64x256xf32>
    %15 = tpu.matmul %13, %14, %cst_14 {dimension_numbers = #tpu.dot_dimension_numbers<[1], [0], [0], [1], [0, 0, 1, 1], [], []>} : vector<64x32xbf16>, vector<32x256xbf16>, vector<64x256xf32> -> vector<64x256xf32>
    %c0_15 = arith.constant 0 : index
    %c0_16 = arith.constant 0 : index
    %16 = vector.load %arg7[%c0_15, %c0_16] : memref<1x256xf32, #tpu.memory_space<vmem>>, vector<1x256xf32>
    %17 = vector.broadcast %16 : vector<1x256xf32> to vector<64x256xf32>
    %18 = arith.addf %15, %17 : vector<64x256xf32>
    %c0_17 = arith.constant 0 : index
    %c0_18 = arith.constant 0 : index
    %19 = vector.load %arg9[%c0_17, %c0_18] : memref<64x256xf32, #tpu.memory_space<vmem>>, vector<64x256xf32>
    tpu.vector_store %arg9[%c0_17, %c0_18], %18 {strides = array<i32>} : memref<64x256xf32, #tpu.memory_space<vmem>>, vector<64x256xf32>,
    return
  }
  func.func @transform_0(%arg0: i32) -> (i32, i32) {
    %c0_i32 = arith.constant 0 : i32
    %c0_i32_0 = arith.constant 0 : i32
    return %arg0, %c0_i32 : i32, i32
  }
  func.func @transform_1(%arg0: i32) -> (i32, i32) {
    %c0_i32 = arith.constant 0 : i32
    %c0_i32_0 = arith.constant 0 : i32
    %c0_i32_1 = arith.constant 0 : i32
    return %c0_i32, %c0_i32_0 : i32, i32
  }
  func.func @transform_2(%arg0: i32) -> (i32, i32) {
    %c0_i32 = arith.constant 0 : i32
    %c0_i32_0 = arith.constant 0 : i32
    %c0_i32_1 = arith.constant 0 : i32
    return %c0_i32, %c0_i32_0 : i32, i32
  }
  func.func @transform_3(%arg0: i32) -> (i32, i32) {
    %c0_i32 = arith.constant 0 : i32
    %c0_i32_0 = arith.constant 0 : i32
    %c0_i32_1 = arith.constant 0 : i32
    return %c0_i32, %c0_i32_0 : i32, i32
  }
  func.func @transform_4(%arg0: i32) -> (i32, i32) {
    %c0_i32 = arith.constant 0 : i32
    %c0_i32_0 = arith.constant 0 : i32
    %c0_i32_1 = arith.constant 0 : i32
    return %c0_i32, %c0_i32_0 : i32, i32
  }
  func.func @transform_5(%arg0: i32) -> (i32, i32) {
    %c0_i32 = arith.constant 0 : i32
    %c0_i32_0 = arith.constant 0 : i32
    %c0_i32_1 = arith.constant 0 : i32
    return %c0_i32, %c0_i32_0 : i32, i32
  }
  func.func @transform_6(%arg0: i32) -> (i32, i32) {
    %c0_i32 = arith.constant 0 : i32
    %c0_i32_0 = arith.constant 0 : i32
    %c0_i32_1 = arith.constant 0 : i32
    return %c0_i32, %c0_i32_0 : i32, i32
  }
  func.func @transform_7(%arg0: i32) -> (i32, i32) {
    %c0_i32 = arith.constant 0 : i32
    %c0_i32_0 = arith.constant 0 : i32
    return %arg0, %c0_i32 : i32, i32
  }
  func.func @transform_8(%arg0: i32) -> (i32, i32) {
    %c0_i32 = arith.constant 0 : i32
    %c0_i32_0 = arith.constant 0 : i32
    return %arg0, %c0_i32 : i32, i32
  }
}

module attributes {stable_mosaic.version = 11 : i64} {
  func.func @_polar_proj_kernel(%arg0: i32, %arg1: memref<32x8x8xf32, #tpu.memory_space<vmem>>, %arg2: memref<32x8x64xf32, #tpu.memory_space<vmem>>, %arg3: memref<8x64xf32, #tpu.memory_space<vmem>>, %arg4: memref<64x256xf32, #tpu.memory_space<vmem>>, %arg5: memref<32x256xf32, #tpu.memory_space<vmem>>) attributes {dimension_semantics = [#tpu.dimension_semantics<parallel>], iteration_bounds = array<i64: 2>, scalar_prefetch = 0 : i64, scratch_operands = 0 : i64, tpu.core_type = #tpu.core_type<tc>, window_params = [{transform_indices = @transform_0, window_bounds = array<i64: 32, 8, 8>}, {transform_indices = @transform_1, window_bounds = array<i64: 32, 8, 64>}, {pipeline_mode = #tpu.pipeline_mode<synchronous>, transform_indices = @transform_2, window_bounds = array<i64: 8, 64>}, {pipeline_mode = #tpu.pipeline_mode<synchronous>, transform_indices = @transform_3, window_bounds = array<i64: 64, 256>}, {transform_indices = @transform_4, window_bounds = array<i64: 32, 256>}]} {
    %c0 = arith.constant 0 : index
    %c0_0 = arith.constant 0 : index
    %c0_1 = arith.constant 0 : index
    %0 = vector.load %arg2[%c0, %c0_0, %c0_1] : memref<32x8x64xf32, #tpu.memory_space<vmem>>, vector<32x8x64xf32>
    %cst = arith.constant dense<0xFF800000> : vector<32x64xf32>
    %1 = vector.multi_reduction <maximumf>, %0, %cst [1] : vector<32x8x64xf32> to vector<32x64xf32>
    %2 = vector.shape_cast %1 : vector<32x64xf32> to vector<32x1x64xf32>
    %3 = vector.broadcast %2 : vector<32x1x64xf32> to vector<32x8x64xf32>
    %4 = arith.subf %0, %3 : vector<32x8x64xf32>
    %5 = math.exp %4 : vector<32x8x64xf32>
    %c0_2 = arith.constant 0 : index
    %c0_3 = arith.constant 0 : index
    %c0_4 = arith.constant 0 : index
    %6 = vector.load %arg1[%c0_2, %c0_3, %c0_4] : memref<32x8x8xf32, #tpu.memory_space<vmem>>, vector<32x8x8xf32>
    %7 = vector.shape_cast %6 : vector<32x8x8xf32> to vector<256x8xf32>
    %c0_5 = arith.constant 0 : index
    %c0_6 = arith.constant 0 : index
    %8 = vector.load %arg3[%c0_5, %c0_6] : memref<8x64xf32, #tpu.memory_space<vmem>>, vector<8x64xf32>
    %cst_7 = arith.constant dense<0.000000e+00> : vector<256x64xf32>
    %9 = tpu.matmul %7, %8, %cst_7 {dimension_numbers = #tpu.dot_dimension_numbers<[1], [0], [0], [1], [0, 0, 1, 1], [], []>} : vector<256x8xf32>, vector<8x64xf32>, vector<256x64xf32> -> vector<256x64xf32>
    %10 = vector.shape_cast %9 : vector<256x64xf32> to vector<32x8x64xf32>
    %11 = arith.mulf %5, %10 : vector<32x8x64xf32>
    %cst_8 = arith.constant dense<0.000000e+00> : vector<32x64xf32>
    %12 = vector.multi_reduction <add>, %11, %cst_8 [1] : vector<32x8x64xf32> to vector<32x64xf32>
    %cst_9 = arith.constant dense<0.000000e+00> : vector<32x64xf32>
    %13 = vector.multi_reduction <add>, %5, %cst_9 [1] : vector<32x8x64xf32> to vector<32x64xf32>
    %14 = tpu.reciprocal %13 {approx = true} : vector<32x64xf32> -> vector<32x64xf32>
    %15 = arith.mulf %12, %14 : vector<32x64xf32>
    %c0_10 = arith.constant 0 : index
    %c0_11 = arith.constant 0 : index
    %16 = vector.load %arg4[%c0_10, %c0_11] : memref<64x256xf32, #tpu.memory_space<vmem>>, vector<64x256xf32>
    %cst_12 = arith.constant dense<0.000000e+00> : vector<32x256xf32>
    %17 = tpu.matmul %15, %16, %cst_12 {dimension_numbers = #tpu.dot_dimension_numbers<[1], [0], [0], [1], [0, 0, 1, 1], [], []>} : vector<32x64xf32>, vector<64x256xf32>, vector<32x256xf32> -> vector<32x256xf32>
    %c0_13 = arith.constant 0 : index
    %c0_14 = arith.constant 0 : index
    %18 = vector.load %arg5[%c0_13, %c0_14] : memref<32x256xf32, #tpu.memory_space<vmem>>, vector<32x256xf32>
    tpu.vector_store %arg5[%c0_13, %c0_14], %17 {strides = array<i32>} : memref<32x256xf32, #tpu.memory_space<vmem>>, vector<32x256xf32>,
    return
  }
  func.func @transform_0(%arg0: i32) -> (i32, i32, i32) {
    %c0_i32 = arith.constant 0 : i32
    %c0_i32_0 = arith.constant 0 : i32
    %c0_i32_1 = arith.constant 0 : i32
    return %arg0, %c0_i32, %c0_i32_0 : i32, i32, i32
  }
  func.func @transform_1(%arg0: i32) -> (i32, i32, i32) {
    %c0_i32 = arith.constant 0 : i32
    %c0_i32_0 = arith.constant 0 : i32
    %c0_i32_1 = arith.constant 0 : i32
    return %arg0, %c0_i32, %c0_i32_0 : i32, i32, i32
  }
  func.func @transform_2(%arg0: i32) -> (i32, i32) {
    %c0_i32 = arith.constant 0 : i32
    %c0_i32_0 = arith.constant 0 : i32
    %c0_i32_1 = arith.constant 0 : i32
    return %c0_i32, %c0_i32_0 : i32, i32
  }
  func.func @transform_3(%arg0: i32) -> (i32, i32) {
    %c0_i32 = arith.constant 0 : i32
    %c0_i32_0 = arith.constant 0 : i32
    %c0_i32_1 = arith.constant 0 : i32
    return %c0_i32, %c0_i32_0 : i32, i32
  }
  func.func @transform_4(%arg0: i32) -> (i32, i32) {
    %c0_i32 = arith.constant 0 : i32
    %c0_i32_0 = arith.constant 0 : i32
    return %arg0, %c0_i32 : i32, i32
  }
}

</mosaic_0001>

<bundles_post_ra>
// kernel: bev_projection_forward.2
= control target key start
LH: loop header
LB: loop body
LE: loop exit
PB: predicated region body
PF: predicated region fallthrough
CT: control target
= control target key end

     0   :  { %s1698_s27 = smov 0   ;;  %s2058_s0 = inlined_call_operand.vmem [shape: bf16[128,128], index: 0, kind: input, shape index: {}]   ;;  %s2059_s1 = inlined_call_operand.vmem [shape: bf16[128,512], index: 1, kind: input, shape index: {}]   ;;  %s2060_s2 = inlined_call_operand.vmem [shape: f32[1,512], index: 2, kind: input, shape index: {}]   ;;  %s2061_s3 = inlined_call_operand.vmem [shape: bf16[512,32], index: 3, kind: input, shape index: {}]   ;;  %s2062_s4 = inlined_call_operand.vmem [shape: f32[1,32], index: 4, kind: input, shape index: {}]   ;;  %s2063_s5 = inlined_call_operand.vmem [shape: bf16[32,256], index: 5, kind: input, shape index: {}]   ;;  %s2064_s6 = inlined_call_operand.vmem [shape: f32[1,256], index: 6, kind: input, shape index: {}]   ;;  %s2065_s7 = inlined_call_operand.vmem [shape: f32[128,32], index: 7, kind: output, shape index: {0}]   ;;  %s2066_s8 = inlined_call_operand.vmem [shape: f32[128,256], index: 8, kind: output, shape index: {1}]  }
   0x1 LB: > { %s1369_s28 = sadd.s32 4294967295, %s1650_s27   ;;  %p1373_p0 = scmp.ge.s32.totalorder %s1650_s27, 1  ;;  %s1650_s27 = sphi %s1698_s27, %s19_s27  }
   0x2   : > { %p266_p1 = scmp.lt.s32.totalorder %s1650_s27, 3 }
   0x4   : > { %p267_p2 = pnand %p1373_p0, %p266_p1 }
   0x5   : > { %v1554_v0 = vld [vmem:[%s2059_s1 + $0x4] ss:$16 sps:$4 sm:$0xff] (!%p267_p2)   ;;  %v1556_v1 = vld [vmem:[%s2059_s1 + $0xc] ss:$16 sps:$4 sm:$0xff] (!%p267_p2)   ;;  %v1652_v2 = vmov (!%p267_p2), 0   ;;  %s1374_s25 = sshll.u32 (!%p267_p2), %s1369_s28, 3 }
   0x6   : > { %270 = sbr.rel (%p267_p2) target bundleno = 724 (0x2d4), region = 48  ;;  %604 = vmatprep.mubr.bf16.mxu0 (!%p267_p2), %v1652_v2  ;;  %677 = vmatprep.mubr.bf16.mxu1 (!%p267_p2), %v1652_v2  ;;  %v1558_v3 = vld [vmem:[%s2059_s1] ss:$16 sps:$4 sm:$0xff] (!%p267_p2)   ;;  %v1559_v4 = vld [vmem:[%s2059_s1 + $0x8] ss:$16 sps:$4 sm:$0xff] (!%p267_p2)   ;;  %p307_p3 = scmp.lt.s32.totalorder (!%p267_p2), %s1374_s25, 15 }
   0x7   : > { %572 = vmatprep.subr.bf16.mxu0 (!%p267_p2), %v1554_v0  ;;  %645 = vmatprep.subr.bf16.mxu1 (!%p267_p2), %v1556_v1  ;;  %v1560_v5 = vld [vmem:[%s2059_s1 + $0x24] ss:$16 sps:$4 sm:$0xff] (!%p267_p2)   ;;  %v1562_v6 = vld [vmem:[%s2059_s1 + $0x2c] ss:$16 sps:$4 sm:$0xff] (!%p267_p2)   ;;  %v1564_v7 = vld [vmem:[%s2059_s1 + $0x20] ss:$16 sps:$4 sm:$0xff] (!%p267_p2)  }
   0x8   : > { %573 = vmatpush1.bf16.msra.mxu0 (!%p267_p2), %v1558_v3  ;;  %646 = vmatpush1.bf16.msra.mxu1 (!%p267_p2), %v1559_v4  ;;  %v1565_v8 = vld [vmem:[%s2059_s1 + $0x28] ss:$16 sps:$4 sm:$0xff] (!%p267_p2)   ;;  %v1566_v9 = vld [vmem:[%s2059_s1 + $0x44] ss:$16 sps:$4 sm:$0xff] (!%p267_p2)   ;;  %v1568_v10 = vld [vmem:[%s2059_s1 + $0x4c] ss:$16 sps:$4 sm:$0xff] (!%p267_p2)  }
   0x9   : > { %574 = vmatprep.subr.bf16.mxu0 (!%p267_p2), %v1560_v5  ;;  %647 = vmatprep.subr.bf16.mxu1 (!%p267_p2), %v1562_v6  ;;  %v1570_v11 = vld [vmem:[%s2059_s1 + $0x40] ss:$16 sps:$4 sm:$0xff] (!%p267_p2)   ;;  %v1571_v12 = vld [vmem:[%s2059_s1 + $0x48] ss:$16 sps:$4 sm:$0xff] (!%p267_p2)   ;;  %v1572_v13 = vld [vmem:[%s2059_s1 + $0x64] ss:$16 sps:$4 sm:$0xff] (!%p267_p2)  }
   0xa   : > { %v1574_v14 = vld [vmem:[%s2059_s1 + $0x6c] ss:$16 sps:$4 sm:$0xff] (!%p267_p2)   ;;  %v1576_v15 = vld [vmem:[%s2059_s1 + $0x60] ss:$16 sps:$4 sm:$0xff] (!%p267_p2)   ;;  %v1577_v16 = vld [vmem:[%s2059_s1 + $0x68] ss:$16 sps:$4 sm:$0xff] (!%p267_p2)  }
   0xb   : > { %v1578_v17 = vld [vmem:[%s2059_s1 + $0x84] ss:$16 sps:$4 sm:$0xff] (!%p267_p2)   ;;  %v1580_v18 = vld [vmem:[%s2059_s1 + $0x8c] ss:$16 sps:$4 sm:$0xff] (!%p267_p2)   ;;  %v1582_v19 = vld [vmem:[%s2059_s1 + $0x80] ss:$16 sps:$4 sm:$0xff] (!%p267_p2)  }
   0xc   : > { %575 = vmatpush1.bf16.msra.mxu0 (!%p267_p2), %v1564_v7  ;;  %648 = vmatpush1.bf16.msra.mxu1 (!%p267_p2), %v1565_v8  ;;  %v1583_v20 = vld [vmem:[%s2059_s1 + $0x88] ss:$16 sps:$4 sm:$0xff] (!%p267_p2)   ;;  %v1584_v21 = vld [vmem:[%s2059_s1 + $0xa4] ss:$16 sps:$4 sm:$0xff] (!%p267_p2)   ;;  %v1586_v22 = vld [vmem:[%s2059_s1 + $0xac] ss:$16 sps:$4 sm:$0xff] (!%p267_p2)   ;;  %v368_v7 = vlaneseq (!%p267_p2) }
   0xd   : > { %576 = vmatprep.subr.bf16.mxu0 %v1566_v9  ;;  %649 = vmatprep.subr.bf16.mxu1 %v1568_v10  ;;  %s2068_s25 = smov (!%p307_p3, %s1374_s25), 15  ;;  %v1588_v23 = vld [vmem:[%s2059_s1 + $0xa0] ss:$16 sps:$4 sm:$0xff]   ;;  %v1589_v24 = vld [vmem:[%s2059_s1 + $0xa8] ss:$16 sps:$4 sm:$0xff]   ;;  %vm1127_vm0 = vcmask 261120  }
   0xe   : > { %s1375_s12 = sshll.u32 %s2068_s25, 2  ;;  %v1590_v25 = vld [vmem:[%s2059_s1 + $0xc4] ss:$16 sps:$4 sm:$0xff]   ;;  %v1592_v26 = vld [vmem:[%s2059_s1 + $0xcc] ss:$16 sps:$4 sm:$0xff]   ;;  %v1921_v8 = vshrl.u32 %v368_v7, 7 }
   0xf   : > { %s1789_s20 = scalar_lea.vmem %s2058_s0, %s1375_s12  ;;  %v1594_v27 = vld [vmem:[%s2059_s1 + $0xc0] ss:$16 sps:$4 sm:$0xff]   ;;  %v1595_v28 = vld [vmem:[%s2059_s1 + $0xc8] ss:$16 sps:$4 sm:$0xff]   ;;  %v1596_v29 = vld [vmem:[%s2059_s1 + $0xe4] ss:$16 sps:$4 sm:$0xff]  }
  0x10   : > { %577 = vmatpush1.bf16.msra.mxu0 %v1570_v11  ;;  %650 = vmatpush1.bf16.msra.mxu1 %v1571_v12  ;;  %v1598_v30 = vld [vmem:[%s2059_s1 + $0xec] ss:$16 sps:$4 sm:$0xff]   ;;  %v1600_v31 = vld [vmem:[%s2059_s1 + $0xe0] ss:$16 sps:$4 sm:$0xff]   ;;  %v1601_v32 = vld [vmem:[%s2059_s1 + $0xe8] ss:$16 sps:$4 sm:$0xff]  }
  0x11   : > { %578 = vmatprep.subr.bf16.mxu0 %v1572_v13  ;;  %651 = vmatprep.subr.bf16.mxu1 %v1574_v14  ;;  %v1606_v33 = vld [vmem:[%s2061_s3 + $0x40] sm:$0xff]   ;;  %v1610_v38 = vld [vmem:[%s2061_s3 + $0x48] sm:$0xff]   ;;  %v1614_v43 = vld [vmem:[%s2061_s3 + $0x50] sm:$0xff]   ;;  %v378_v9 = vsub.s32 2, %v1921_v8  ;;  %v382_v10 = vsub.s32 3, %v1921_v8  ;;  %v370_v11 = vsub.s32 0, %v1921_v8 }
  0x12   : > { %v1608_v34 = vld [vmem:[%s2061_s3 + $0xc0] sm:$0xff]   ;;  %v1612_v39 = vld [vmem:[%s2061_s3 + $0xc8] sm:$0xff]   ;;  %v1616_v44 = vld [vmem:[%s2061_s3 + $0xd0] sm:$0xff]   ;;  %v374_v13 = vsub.s32 1, %v1921_v8  ;;  %s1377_s28 = sshll.u32 %s2068_s25, 3  ;;  %s1460_s19 = sshll.u32 %s2068_s25, 4 }
  0x13   : > { %v1602_v35 = vld [vmem:[%s1789_s20] sm:$0xff]   ;;  %v1611_v40 = vld [vmem:[%s2061_s3 + $0x8] sm:$0xff]   ;;  %v1615_v45 = vld [vmem:[%s2061_s3 + $0x10] sm:$0xff]   ;;  %s1995_s16 = scalar_lea.vmem %s2065_s7, %s1377_s28  ;;  %s2037_s23 = scalar_lea.vmem %s2066_s8, %s1460_s19 }
  0x14   : > { %579 = vmatpush1.bf16.msra.mxu0 %v1576_v15  ;;  %652 = vmatpush1.bf16.msra.mxu1 %v1577_v16  ;;  %v1607_v36 = vld [vmem:[%s2061_s3] sm:$0xff]   ;;  %v1613_v41 = vld [vmem:[%s2061_s3 + $0x88] sm:$0xff]   ;;  %v1617_v46 = vld [vmem:[%s2061_s3 + $0x90] sm:$0xff]  }
  0x15   : > { %580 = vmatprep.subr.bf16.mxu0 %v1578_v17  ;;  %653 = vmatprep.subr.bf16.mxu1 %v1580_v18  ;;  %v1609_v37 = vld [vmem:[%s2061_s3 + $0x80] sm:$0xff]   ;;  %v1603_v42 = vld [vmem:[%s1789_s20 + $0x8] sm:$0xff]   ;;  %v1618_v47 = vld [vmem:[%s2061_s3 + $0x58] sm:$0xff]  }
  0x16   : > { %v1620_v48 = vld [vmem:[%s2061_s3 + $0xd8] sm:$0xff]   ;;  %v1604_v51 = vld [vmem:[%s1789_s20 + $0x10] sm:$0xff]   ;;  %v1622_v52 = vld [vmem:[%s2061_s3 + $0x60] sm:$0xff]  }
  0x17   : > { %v1619_v49 = vld [vmem:[%s2061_s3 + $0x18] sm:$0xff]   ;;  %v1624_v53 = vld [vmem:[%s2061_s3 + $0xe0] sm:$0xff]   ;;  %v1626_v56 = vld [vmem:[%s2061_s3 + $0x68] sm:$0xff]  }
  0x18   : > { %581 = vmatpush1.bf16.msra.mxu0 %v1582_v19  ;;  %654 = vmatpush1.bf16.msra.mxu1 %v1583_v20  ;;  %v1621_v50 = vld [vmem:[%s2061_s3 + $0x98] sm:$0xff]   ;;  %v1623_v54 = vld [vmem:[%s2061_s3 + $0x20] sm:$0xff]   ;;  %v1628_v57 = vld [vmem:[%s2061_s3 + $0xe8] sm:$0xff]  }
  0x19   : > { %582 = vmatprep.subr.bf16.mxu0 %v1584_v21  ;;  %655 = vmatprep.subr.bf16.mxu1 %v1586_v22  ;;  %v1625_v55 = vld [vmem:[%s2061_s3 + $0xa0] sm:$0xff]   ;;  %v1627_v58 = vld [vmem:[%s2061_s3 + $0x28] sm:$0xff]   ;;  %v1605_v60 = vld [vmem:[%s1789_s20 + $0x18] sm:$0xff]  }
  0x1a   : > { %v1629_v59 = vld [vmem:[%s2061_s3 + $0xa8] sm:$0xff]   ;;  %v1630_v61 = vld [vmem:[%s2061_s3 + $0x70] sm:$0xff]   ;;  %v1634_v1 = vld [vmem:[%s2061_s3 + $0x78] sm:$0xff]  }
  0x1b   : > { %v1632_v62 = vld [vmem:[%s2061_s3 + $0xf0] sm:$0xff]   ;;  %v1636_v3 = vld [vmem:[%s2061_s3 + $0xf8] sm:$0xff]   ;;  %v1640_v6 = vld [vmem:[%s2063_s5 + $0x4] ss:$8 sps:$4 sm:$0xff]  }
  0x1c   : > { %583 = vmatpush1.bf16.msra.mxu0 %v1588_v23  ;;  %656 = vmatpush1.bf16.msra.mxu1 %v1589_v24  ;;  %v1631_v63 = vld [vmem:[%s2061_s3 + $0x30] sm:$0xff]   ;;  %v1635_v4 = vld [vmem:[%s2061_s3 + $0x38] sm:$0xff]   ;;  %v366_v12 = vld [vmem:[%s2060_s2] sm:$0xf] }
  0x1d   : > { %584 = vmatprep.subr.bf16.mxu0 %v1590_v25  ;;  %657 = vmatprep.subr.bf16.mxu1 %v1592_v26  ;;  %v1633_v0 = vld [vmem:[%s2061_s3 + $0xb0] sm:$0xff]   ;;  %v1637_v5 = vld [vmem:[%s2061_s3 + $0xb8] sm:$0xff]   ;;  %v1930_v14 = vrot.slane %v366_v12, %v378_v9  ;;  %v1932_v15 = vrot.slane %v366_v12, %v382_v10  ;;  %v1936_v16 = vrot.slane %v366_v12, %v370_v11 }
  0x1e   : > { %v1940_v19 = vrot.slane %v366_v12, %v374_v13 }
  0x20   : > { %585 = vmatpush1.bf16.msra.mxu0 %v1594_v27  ;;  %658 = vmatpush1.bf16.msra.mxu1 %v1595_v28 }
  0x21   : > { %586 = vmatprep.subr.bf16.mxu0 %v1596_v29  ;;  %659 = vmatprep.subr.bf16.mxu1 %v1598_v30 }
  0x24   : > { %587 = vmatpush1.bf16.msra.mxu0 %v1600_v31  ;;  %660 = vmatpush1.bf16.msra.mxu1 %v1601_v32 }
  0x25   : > { %1461 = vmatprep.subr.bf16.mxu0 %v1606_v33  ;;  %1501 = vmatprep.subr.bf16.mxu1 %v1608_v34 }
  0x27   : > { %605 = vmatmul.mubr.bf16.vlgmr.msra.gmra.mrb[0].mxu0 %v1602_v35  ;;  %678 = vmatmul.mubr.bf16.vlgmr.msra.gmra.mrb[0].mxu1 %v1602_v35 }
  0x28   : > { %614 = vmatprep.mubr.bf16.mxu0 %v1652_v2  ;;  %687 = vmatprep.mubr.bf16.mxu1 %v1652_v2 }
  0x29   : > { %1462 = vmatpush3.bf16.msra.mxu0 %v1607_v36  ;;  %1502 = vmatpush3.bf16.msra.mxu1 %v1609_v37 }
  0x2a   : > { %1463 = vmatprep.subr.bf16.mxu0 %v1610_v38  ;;  %1503 = vmatprep.subr.bf16.mxu1 %v1612_v39  ;;  %v1638_v38 = vld [vmem:[%s2063_s5] ss:$8 sps:$4 sm:$0xff]  }
  0x2d   : > { %1464 = vmatpush3.bf16.msra.mxu0 %v1611_v40  ;;  %1504 = vmatpush3.bf16.msra.mxu1 %v1613_v41 }
  0x2e   : > { %1465 = vmatprep.subr.bf16.mxu0 %v1614_v43  ;;  %1505 = vmatprep.subr.bf16.mxu1 %v1616_v44 }
  0x2f   : > { %615 = vmatmul.mubr.bf16.gmra.mrb[4].mxu0 %v1603_v42  ;;  %688 = vmatmul.mubr.bf16.gmra.mrb[4].mxu1 %v1603_v42 }
  0x30   : > { %624 = vmatprep.mubr.bf16.mxu0 %v1652_v2  ;;  %697 = vmatprep.mubr.bf16.mxu1 %v1652_v2 }
  0x31   : > { %1466 = vmatpush3.bf16.msra.mxu0 %v1615_v45  ;;  %1506 = vmatpush3.bf16.msra.mxu1 %v1617_v46 }
  0x32   : > { %1467 = vmatprep.subr.bf16.mxu0 %v1618_v47  ;;  %1507 = vmatprep.subr.bf16.mxu1 %v1620_v48 }
  0x35   : > { %1468 = vmatpush3.bf16.msra.mxu0 %v1619_v49  ;;  %1508 = vmatpush3.bf16.msra.mxu1 %v1621_v50 }
  0x36   : > { %1469 = vmatprep.subr.bf16.mxu0 %v1622_v52  ;;  %1509 = vmatprep.subr.bf16.mxu1 %v1624_v53 }
  0x37   : > { %625 = vmatmul.mubr.bf16.gmra.mrb[8].mxu0 %v1604_v51  ;;  %698 = vmatmul.mubr.bf16.gmra.mrb[8].mxu1 %v1604_v51 }
  0x38   : > { %634 = vmatprep.mubr.bf16.mxu0 %v1652_v2  ;;  %707 = vmatprep.mubr.bf16.mxu1 %v1652_v2 }
  0x39   : > { %1470 = vmatpush3.bf16.msra.mxu0 %v1623_v54  ;;  %1510 = vmatpush3.bf16.msra.mxu1 %v1625_v55 }
  0x3a   : > { %1471 = vmatprep.subr.bf16.mxu0 %v1626_v56  ;;  %1511 = vmatprep.subr.bf16.mxu1 %v1628_v57 }
  0x3d   : > { %1472 = vmatpush3.bf16.msra.mxu0 %v1627_v58  ;;  %1512 = vmatpush3.bf16.msra.mxu1 %v1629_v59 }
  0x3e   : > { %1473 = vmatprep.subr.bf16.mxu0 %v1630_v61  ;;  %1513 = vmatprep.subr.bf16.mxu1 %v1632_v62 }
  0x3f   : > { %635 = vmatmul.mubr.bf16.gmra.mrb[12].mxu0 %v1605_v60  ;;  %708 = vmatmul.mubr.bf16.gmra.mrb[12].mxu1 %v1605_v60 }
  0x41   : > { %1474 = vmatpush3.bf16.msra.mxu0 %v1631_v63  ;;  %1514 = vmatpush3.bf16.msra.mxu1 %v1633_v0 }
  0x42   : > { %1475 = vmatprep.subr.bf16.mxu0 %v1634_v1  ;;  %1515 = vmatprep.subr.bf16.mxu1 %v1636_v3 }
  0x45   : > { %1476 = vmatpush3.bf16.msra.mxu0 %v1635_v4  ;;  %1516 = vmatpush3.bf16.msra.mxu1 %v1637_v5 }
  0x46   : > { %1188 = vmatprep.subr.bf16.mxu0 %v1640_v6  ;;  %1541 = vmatprep.subr.bf16.mxu1 %v1640_v6 }
  0xfa   : > { %v606_v17 = vpop.f32.mrb[0].mxu0  ;;  %v679_v18 = vpop.f32.mrb[0].mxu1 }
  0xfb   : > { %v680_v20 = vadd.f32 %v679_v18, %v1930_v14  ;;  %v608_v21 = vpop.f32.mrb[1].mxu0  ;;  %v681_v22 = vpop.f32.mrb[1].mxu1  ;;  %v607_v26 = vadd.f32 %v606_v17, %v1936_v16 }
  0xfc   : > { %v682_v23 = vadd.f32 %v681_v22, %v1932_v15  ;;  %v610_v24 = vpop.f32.mrb[2].mxu0  ;;  %v683_v25 = vpop.f32.mrb[2].mxu1  ;;  %v609_v31 = vadd.f32 %v608_v21, %v1940_v19 }
  0xfd   : > { %v611_v27 = vadd.f32 %v610_v24, %v1936_v16  ;;  %v684_v28 = vadd.f32 %v683_v25, %v1930_v14  ;;  %v612_v29 = vpop.f32.mrb[3].mxu0  ;;  %v685_v30 = vpop.f32.mrb[3].mxu1 }
  0xfe   : > { %v613_v32 = vadd.f32 %v612_v29, %v1940_v19  ;;  %v686_v33 = vadd.f32 %v685_v30, %v1932_v15 }
  0xff   : > { %v718_v34 = vpack.c.bf16 %v611_v27, %v607_v26  ;;  %v720_v35 = vpack.c.bf16 %v684_v28, %v680_v20 }
 0x100   : > { %v719_v36 = vpack.c.bf16 %v613_v32, %v609_v31  ;;  %v721_v37 = vpack.c.bf16 %v686_v33, %v682_v23 }
 0x102   : > { %v616_v39 = vpop.f32.mrb[4].mxu0  ;;  %v689_v40 = vpop.f32.mrb[4].mxu1  ;;  %1029 = vmatprep.mubr.bf16.mxu0 %v719_v36  ;;  %1094 = vmatprep.mubr.bf16.mxu1 %v721_v37 }
 0x103   : > { %v690_v41 = vadd.f32 %v689_v40, %v1930_v14  ;;  %v618_v42 = vpop.f32.mrb[5].mxu0  ;;  %v691_v43 = vpop.f32.mrb[5].mxu1  ;;  %1030 = vmatmul.mubr.bf16.vlgmr.msra.gmra.mrb[16].mxu0 %v718_v34  ;;  %1095 = vmatmul.mubr.bf16.vlgmr.msra.gmra.mrb[16].mxu1 %v720_v35  ;;  %v617_v47 = vadd.f32 %v616_v39, %v1936_v16 }
 0x104   : > { %v692_v44 = vadd.f32 %v691_v43, %v1932_v15  ;;  %v620_v45 = vpop.f32.mrb[6].mxu0  ;;  %v693_v46 = vpop.f32.mrb[6].mxu1  ;;  %1189 = vmatpush1.bf16.msra.mxu0 %v1638_v38  ;;  %1543 = vmatpush1.bf16.msra.mxu1 %v1638_v38  ;;  %v619_v52 = vadd.f32 %v618_v42, %v1940_v19  ;;  %v1988_v43 = vld [vmem:[%s2062_s4] ss:$0 sm:$0xff] }
 0x105   : > { %v621_v48 = vadd.f32 %v620_v45, %v1936_v16  ;;  %v694_v49 = vadd.f32 %v693_v46, %v1930_v14  ;;  %v622_v50 = vpop.f32.mrb[7].mxu0  ;;  %v695_v51 = vpop.f32.mrb[7].mxu1 }
 0x106   : > { %v623_v53 = vadd.f32 %v622_v50, %v1940_v19  ;;  %v696_v54 = vadd.f32 %v695_v51, %v1932_v15 }
 0x107   : > { %v722_v55 = vpack.c.bf16 %v621_v48, %v617_v47  ;;  %v724_v56 = vpack.c.bf16 %v694_v49, %v690_v41 }
 0x108   : > { %v723_v57 = vpack.c.bf16 %v623_v53, %v619_v52  ;;  %v725_v58 = vpack.c.bf16 %v696_v54, %v692_v44 }
 0x10a   : > { %v626_v59 = vpop.f32.mrb[8].mxu0  ;;  %v699_v60 = vpop.f32.mrb[8].mxu1  ;;  %1037 = vmatprep.mubr.bf16.mxu0 %v723_v57  ;;  %1102 = vmatprep.mubr.bf16.mxu1 %v725_v58 }
 0x10b   : > { %v700_v61 = vadd.f32 %v699_v60, %v1930_v14  ;;  %v628_v62 = vpop.f32.mrb[9].mxu0  ;;  %v701_v63 = vpop.f32.mrb[9].mxu1  ;;  %1038 = vmatmul.mubr.bf16.gmra.mrb[20].mxu0 %v722_v55  ;;  %1103 = vmatmul.mubr.bf16.gmra.mrb[20].mxu1 %v724_v56  ;;  %v627_v4 = vadd.f32 %v626_v59, %v1936_v16 }
 0x10c   : > { %v702_v0 = vadd.f32 %v701_v63, %v1932_v15  ;;  %v630_v1 = vpop.f32.mrb[10].mxu0  ;;  %v703_v3 = vpop.f32.mrb[10].mxu1  ;;  %v629_v10 = vadd.f32 %v628_v62, %v1940_v19 }
 0x10d   : > { %v631_v5 = vadd.f32 %v630_v1, %v1936_v16  ;;  %v704_v6 = vadd.f32 %v703_v3, %v1930_v14  ;;  %v632_v7 = vpop.f32.mrb[11].mxu0  ;;  %v705_v9 = vpop.f32.mrb[11].mxu1 }
 0x10e   : > { %v633_v12 = vadd.f32 %v632_v7, %v1940_v19  ;;  %v706_v17 = vadd.f32 %v705_v9, %v1932_v15 }
 0x10f   : > { %v726_v18 = vpack.c.bf16 %v631_v5, %v627_v4  ;;  %v728_v20 = vpack.c.bf16 %v704_v6, %v700_v61 }
 0x110   : > { %v727_v21 = vpack.c.bf16 %v633_v12, %v629_v10  ;;  %v729_v22 = vpack.c.bf16 %v706_v17, %v702_v0 }
 0x112   : > { %v636_v23 = vpop.f32.mrb[12].mxu0  ;;  %v709_v24 = vpop.f32.mrb[12].mxu1  ;;  %1045 = vmatprep.mubr.bf16.mxu0 %v727_v21  ;;  %1110 = vmatprep.mubr.bf16.mxu1 %v729_v22 }
 0x113   : > { %v710_v25 = vadd.f32 %v709_v24, %v1930_v14  ;;  %v638_v26 = vpop.f32.mrb[13].mxu0  ;;  %v711_v27 = vpop.f32.mrb[13].mxu1  ;;  %1046 = vmatmul.mubr.bf16.gmra.mrb[24].mxu0 %v726_v18  ;;  %1111 = vmatmul.mubr.bf16.gmra.mrb[24].mxu1 %v728_v20  ;;  %v637_v31 = vadd.f32 %v636_v23, %v1936_v16 }
 0x114   : > { %v712_v28 = vadd.f32 %v711_v27, %v1932_v15  ;;  %v640_v29 = vpop.f32.mrb[14].mxu0  ;;  %v713_v30 = vpop.f32.mrb[14].mxu1  ;;  %v639_v36 = vadd.f32 %v638_v26, %v1940_v19 }
 0x115   : > { %v641_v32 = vadd.f32 %v640_v29, %v1936_v16  ;;  %v714_v33 = vadd.f32 %v713_v30, %v1930_v14  ;;  %v642_v34 = vpop.f32.mrb[15].mxu0  ;;  %v715_v35 = vpop.f32.mrb[15].mxu1  ;;  %v1643_v14 = vld [vmem:[%s2063_s5 + $0x14] ss:$8 sps:$4 sm:$0xff]  }
 0x116   : > { %v643_v37 = vadd.f32 %v642_v34, %v1940_v19  ;;  %v716_v38 = vadd.f32 %v715_v35, %v1932_v15  ;;  %v1641_v15 = vld [vmem:[%s2063_s5 + $0x10] ss:$8 sps:$4 sm:$0xff]   ;;  %1190 = vmatprep.subr.bf16.mxu0 %v1643_v14  ;;  %1542 = vmatprep.subr.bf16.mxu1 %v1643_v14 }
 0x117   : > { %v730_v39 = vpack.c.bf16 %v641_v32, %v637_v31  ;;  %v732_v40 = vpack.c.bf16 %v714_v33, %v710_v25  ;;  %1191 = vmatpush1.bf16.msra.mxu0 %v1641_v15  ;;  %1544 = vmatpush1.bf16.msra.mxu1 %v1641_v15 }
 0x118   : > { %v731_v41 = vpack.c.bf16 %v643_v37, %v639_v36  ;;  %v733_v42 = vpack.c.bf16 %v716_v38, %v712_v28 }
 0x11a   : > { %1053 = vmatprep.mubr.bf16.mxu0 %v731_v41  ;;  %1118 = vmatprep.mubr.bf16.mxu1 %v733_v42 }
 0x11b   : > { %1054 = vmatmul.mubr.bf16.gmra.mrb[28].mxu0 %v730_v39  ;;  %1119 = vmatmul.mubr.bf16.gmra.mrb[28].mxu1 %v732_v40 }
 0x11c   : > { %1220 = vmatprep.mubr.bf16.mxu0 %v1652_v2  ;;  %1240 = vmatprep.mubr.bf16.mxu1 %v1652_v2 }
 0x1d6   : > { %v1477_v16 = vpop.f32.mrb[16].mxu0  ;;  %v1517_v19 = vpop.f32.mrb[16].mxu1 }
 0x1d7   : > { %v1478_v44 = vpop.f32.mrb[17].mxu0  ;;  %v1518_v45 = vpop.f32.mrb[17].mxu1 }
 0x1d8   : > { %v1479_v46 = vadd.f32 %v1478_v44, %v1477_v16  ;;  %v1519_v47 = vadd.f32 %v1518_v45, %v1517_v19  ;;  %v1480_v48 = vpop.f32.mrb[18].mxu0  ;;  %v1520_v49 = vpop.f32.mrb[18].mxu1 }
 0x1d9   : > { %v1481_v50 = vpop.f32.mrb[19].mxu0  ;;  %v1521_v51 = vpop.f32.mrb[19].mxu1 }
 0x1da   : > { %v1032_v52 = vadd.f32 %v1479_v46, %v1988_v43  ;;  %v1482_v53 = vadd.f32 %v1481_v50, %v1480_v48  ;;  %v1522_v54 = vadd.f32 %v1521_v51, %v1520_v49  ;;  %v1144_v51 = vld [vmem:[%s2064_s6] sm:$0x3] }
 0x1dc   : > { %v1097_v55 = vadd.f32 %v1519_v47, %v1032_v52  ;;  %v1035_v56 = vadd.f32 %v1482_v53, %v1988_v43  ;;  %v1149_v52 = vrot.slane %v1144_v51, %v370_v11 }
 0x1de   : > { %1128 = vst.msk [vmem:[%s1995_s16] sm:$0xff] %vm1127_vm0, %v1097_v55  ;;  %v1100_v57 = vadd.f32 %v1522_v54, %v1035_v56  ;;  %v1483_v58 = vpop.f32.mrb[20].mxu0  ;;  %v1523_v59 = vpop.f32.mrb[20].mxu1 }
 0x1df   : > { %v1484_v60 = vpop.f32.mrb[21].mxu0  ;;  %v1524_v61 = vpop.f32.mrb[21].mxu1 }
 0x1e0   : > { %1129 = vst.msk [vmem:[%s1995_s16 + $0x8] sm:$0xff] %vm1127_vm0, %v1100_v57  ;;  %v1136_v62 = vpack.c.bf16 %v1100_v57, %v1097_v55  ;;  %v1485_v63 = vadd.f32 %v1484_v60, %v1483_v58  ;;  %v1525_v0 = vadd.f32 %v1524_v61, %v1523_v59  ;;  %v1486_v1 = vpop.f32.mrb[22].mxu0  ;;  %v1526_v3 = vpop.f32.mrb[22].mxu1 }
 0x1e1   : > { %v1487_v4 = vpop.f32.mrb[23].mxu0  ;;  %v1527_v5 = vpop.f32.mrb[23].mxu1 }
 0x1e2   : > { %v1040_v6 = vadd.f32 %v1485_v63, %v1988_v43  ;;  %v1488_v7 = vadd.f32 %v1487_v4, %v1486_v1  ;;  %v1528_v9 = vadd.f32 %v1527_v5, %v1526_v3  ;;  %1454 = vmatmul.mubr.msk.bf16.vlgmr.msra.gmra.mrb[32].mxu0 %vm1127_vm0, %v1136_v62 }
 0x1e3   : > { %1230 = vmatprep.mubr.bf16.mxu0 %v1652_v2 }
 0x1e4   : > { %v1105_v10 = vadd.f32 %v1525_v0, %v1040_v6  ;;  %v1043_v12 = vadd.f32 %v1488_v7, %v1988_v43 }
 0x1e6   : > { %1130 = vst.msk [vmem:[%s1995_s16 + $0x10] sm:$0xff] %vm1127_vm0, %v1105_v10  ;;  %v1108_v17 = vadd.f32 %v1528_v9, %v1043_v12  ;;  %v1489_v18 = vpop.f32.mrb[24].mxu0  ;;  %v1529_v20 = vpop.f32.mrb[24].mxu1 }
 0x1e7   : > { %v1490_v21 = vpop.f32.mrb[25].mxu0  ;;  %v1530_v22 = vpop.f32.mrb[25].mxu1 }
 0x1e8   : > { %1131 = vst.msk [vmem:[%s1995_s16 + $0x18] sm:$0xff] %vm1127_vm0, %v1108_v17  ;;  %v1137_v23 = vpack.c.bf16 %v1108_v17, %v1105_v10  ;;  %v1491_v24 = vadd.f32 %v1490_v21, %v1489_v18  ;;  %v1531_v25 = vadd.f32 %v1530_v22, %v1529_v20  ;;  %v1492_v26 = vpop.f32.mrb[26].mxu0  ;;  %v1532_v27 = vpop.f32.mrb[26].mxu1 }
 0x1e9   : > { %v1493_v28 = vpop.f32.mrb[27].mxu0  ;;  %v1533_v29 = vpop.f32.mrb[27].mxu1 }
 0x1ea   : > { %v1048_v30 = vadd.f32 %v1491_v24, %v1988_v43  ;;  %v1494_v31 = vadd.f32 %v1493_v28, %v1492_v26  ;;  %v1534_v32 = vadd.f32 %v1533_v29, %v1532_v27  ;;  %1455 = vmatmul.mubr.msk.bf16.gmra.mrb[36].mxu0 %vm1127_vm0, %v1137_v23 }
 0x1ec   : > { %v1113_v33 = vadd.f32 %v1531_v25, %v1048_v30  ;;  %v1051_v34 = vadd.f32 %v1494_v31, %v1988_v43 }
 0x1ee   : > { %1132 = vst.msk [vmem:[%s1995_s16 + $0x20] sm:$0xff] %vm1127_vm0, %v1113_v33  ;;  %v1116_v35 = vadd.f32 %v1534_v32, %v1051_v34  ;;  %v1495_v36 = vpop.f32.mrb[28].mxu0  ;;  %v1535_v37 = vpop.f32.mrb[28].mxu1 }
 0x1ef   : > { %v1496_v38 = vpop.f32.mrb[29].mxu0  ;;  %v1536_v39 = vpop.f32.mrb[29].mxu1 }
 0x1f0   : > { %1133 = vst.msk [vmem:[%s1995_s16 + $0x28] sm:$0xff] %vm1127_vm0, %v1116_v35  ;;  %v1138_v40 = vpack.c.bf16 %v1116_v35, %v1113_v33  ;;  %v1497_v41 = vadd.f32 %v1496_v38, %v1495_v36  ;;  %v1537_v42 = vadd.f32 %v1536_v39, %v1535_v37  ;;  %v1498_v14 = vpop.f32.mrb[30].mxu0  ;;  %v1538_v15 = vpop.f32.mrb[30].mxu1 }
 0x1f1   : > { %v1499_v16 = vpop.f32.mrb[31].mxu0  ;;  %v1539_v19 = vpop.f32.mrb[31].mxu1 }
 0x1f2   : > { %v1056_v44 = vadd.f32 %v1497_v41, %v1988_v43  ;;  %v1500_v45 = vadd.f32 %v1499_v16, %v1498_v14  ;;  %v1540_v46 = vadd.f32 %v1539_v19, %v1538_v15  ;;  %1456 = vmatmul.mubr.msk.bf16.vlgmr.msra.gmra.mrb[32].mxu1 %vm1127_vm0, %v1138_v40 }
 0x1f3   : > { %1250 = vmatprep.mubr.bf16.mxu1 %v1652_v2  ;;  %v1153_v2 = vrot.slane %v1144_v51, %v374_v13 }
 0x1f4   : > { %v1121_v47 = vadd.f32 %v1537_v42, %v1056_v44  ;;  %v1059_v48 = vadd.f32 %v1500_v45, %v1988_v43 }
 0x1f6   : > { %1134 = vst.msk [vmem:[%s1995_s16 + $0x30] sm:$0xff] %vm1127_vm0, %v1121_v47  ;;  %v1124_v49 = vadd.f32 %v1540_v46, %v1059_v48 }
 0x1f8   : > { %1135 = vst.msk [vmem:[%s1995_s16 + $0x38] sm:$0xff] %vm1127_vm0, %v1124_v49  ;;  %v1139_v50 = vpack.c.bf16 %v1124_v49, %v1121_v47 }
 0x1fa   : > { %1457 = vmatmul.mubr.msk.bf16.gmra.mrb[36].mxu1 %vm1127_vm0, %v1139_v50 }
 0x2b5   : > { %v1222_v43 = vpop.f32.mrb[32].mxu0 }
 0x2b6   : > { %v1223_v53 = vadd.f32 %v1222_v43, %v1149_v52  ;;  %v1224_v54 = vpop.f32.mrb[33].mxu0 }
 0x2b7   : > { %v1225_v55 = vadd.f32 %v1224_v54, %v1153_v2  ;;  %v1226_v56 = vpop.f32.mrb[34].mxu0 }
 0x2b8   : > { %1261 = vst [vmem:[%s2037_s23] sm:$0xff] %v1223_v53  ;;  %v1227_v11 = vadd.f32 %v1226_v56, %v1149_v52  ;;  %v1228_v8 = vpop.f32.mrb[35].mxu0 }
 0x2b9   : > { %1262 = vst [vmem:[%s2037_s23 + $0x8] sm:$0xff] %v1225_v55  ;;  %v1229_v13 = vadd.f32 %v1228_v8, %v1153_v2 }
 0x2ba   : > { %1263 = vst [vmem:[%s2037_s23 + $0x10] sm:$0xff] %v1227_v11 }
 0x2bb   : > { %1264 = vst [vmem:[%s2037_s23 + $0x18] sm:$0xff] %v1229_v13 }
 0x2bd   : > { %v1232_v57 = vpop.f32.mrb[36].mxu0 }
 0x2be   : > { %v1233_v58 = vadd.f32 %v1232_v57, %v1149_v52  ;;  %v1234_v59 = vpop.f32.mrb[37].mxu0 }
 0x2bf   : > { %v1235_v60 = vadd.f32 %v1234_v59, %v1153_v2  ;;  %v1236_v61 = vpop.f32.mrb[38].mxu0 }
 0x2c0   : > { %1265 = vst [vmem:[%s2037_s23 + $0x20] sm:$0xff] %v1233_v58  ;;  %v1237_v62 = vadd.f32 %v1236_v61, %v1149_v52  ;;  %v1238_v63 = vpop.f32.mrb[39].mxu0 }
 0x2c1   : > { %1266 = vst [vmem:[%s2037_s23 + $0x28] sm:$0xff] %v1235_v60  ;;  %v1239_v0 = vadd.f32 %v1238_v63, %v1153_v2 }
 0x2c2   : > { %1267 = vst [vmem:[%s2037_s23 + $0x30] sm:$0xff] %v1237_v62 }
 0x2c3   : > { %1268 = vst [vmem:[%s2037_s23 + $0x38] sm:$0xff] %v1239_v0 }
 0x2c5   : > { %v1242_v1 = vpop.f32.mrb[32].mxu1 }
 0x2c6   : > { %v1243_v3 = vadd.f32 %v1242_v1, %v1149_v52  ;;  %v1244_v4 = vpop.f32.mrb[33].mxu1 }
 0x2c7   : > { %v1245_v5 = vadd.f32 %v1244_v4, %v1153_v2  ;;  %v1246_v6 = vpop.f32.mrb[34].mxu1 }
 0x2c8   : > { %1269 = vst [vmem:[%s2037_s23 + $0x40] sm:$0xff] %v1243_v3  ;;  %v1247_v7 = vadd.f32 %v1246_v6, %v1149_v52  ;;  %v1248_v9 = vpop.f32.mrb[35].mxu1 }
 0x2c9   : > { %1270 = vst [vmem:[%s2037_s23 + $0x48] sm:$0xff] %v1245_v5  ;;  %v1249_v10 = vadd.f32 %v1248_v9, %v1153_v2 }
 0x2ca   : > { %1271 = vst [vmem:[%s2037_s23 + $0x50] sm:$0xff] %v1247_v7 }
 0x2cb   : > { %1272 = vst [vmem:[%s2037_s23 + $0x58] sm:$0xff] %v1249_v10 }
 0x2cd   : > { %v1252_v12 = vpop.f32.mrb[36].mxu1 }
 0x2ce   : > { %v1253_v17 = vadd.f32 %v1252_v12, %v1149_v52  ;;  %v1254_v18 = vpop.f32.mrb[37].mxu1 }
 0x2cf   : > { %v1255_v20 = vadd.f32 %v1254_v18, %v1153_v2  ;;  %v1256_v21 = vpop.f32.mrb[38].mxu1 }
 0x2d0   : > { %1273 = vst [vmem:[%s2037_s23 + $0x60] sm:$0xff] %v1253_v17  ;;  %v1257_v22 = vadd.f32 %v1256_v21, %v1149_v52  ;;  %v1258_v23 = vpop.f32.mrb[39].mxu1 }
 0x2d1   : > { %1274 = vst [vmem:[%s2037_s23 + $0x68] sm:$0xff] %v1255_v20  ;;  %v1259_v24 = vadd.f32 %v1258_v23, %v1153_v2 }
 0x2d2   : > { %1275 = vst [vmem:[%s2037_s23 + $0x70] sm:$0xff] %v1257_v22 }
 0x2d3   : > { %1276 = vst [vmem:[%s2037_s23 + $0x78] sm:$0xff] %v1259_v24 }
 0x2d4 PF: > { %s19_s27 = sadd.s32 1, %s1650_s27  }
 0x2d5   : > { %p16_p4 = scmp.ge.s32.totalorder %s19_s27, 4  }
 0x2d7   :  { %18 = sbr.rel (!%p16_p4) target bundleno = 1 (0x1), region = 90 }

// kernel: bev_projection_forward.3
= control target key start
LH: loop header
LB: loop body
LE: loop exit
PB: predicated region body
PF: predicated region fallthrough
CT: control target
= control target key end

     0   :  { %s2058_s15 = smov 0   ;;  %s2825_s0 = inlined_call_operand.vmem [shape: f32[64,8,8], index: 0, kind: input, shape index: {}]   ;;  %s2826_s1 = inlined_call_operand.vmem [shape: f32[64,8,64], index: 1, kind: input, shape index: {}]   ;;  %s2827_s2 = inlined_call_operand.vmem [shape: f32[8,64], index: 2, kind: input, shape index: {}]   ;;  %s2828_s3 = inlined_call_operand.vmem [shape: f32[64,256], index: 3, kind: input, shape index: {}]   ;;  %s2829_s4 = inlined_call_operand.vmem [shape: f32[64,256], index: 4, kind: output, shape index: {}]  }
   0x1 LB: > { %s1735_s16 = sadd.s32 4294967295, %s2030_s15   ;;  %p1739_p0 = scmp.ge.s32.totalorder %s2030_s15, 1  ;;  %s2030_s15 = sphi %s2058_s15, %s14_s15  }
   0x2   : > { %p174_p1 = scmp.lt.s32.totalorder %s2030_s15, 3 }
   0x4   : > { %p175_p2 = pnand %p1739_p0, %p174_p1 }
   0x6   : > { %178 = sbr.rel (%p175_p2) target bundleno = 542 (0x21e), region = 36 }
   0xd   : > { %v610_v0 = vld [vmem:[%s2827_s2] sm:$0xff]  ;;  %s1740_s19 = sshll.u32 %s1735_s16, 5  ;;  %vm611_vm0 = vcmask 64512   ;;  %vm257_vm1 = vcmask 523264   ;;  %vm1525_vm2 = vcmask 1041409   ;;  %vm1527_vm3 = vcmask 1042434  }
   0xe   : > { %1819 = vmatprep.subr.mxu0 %v610_v0  ;;  %p207_p3 = scmp.lt.s32.totalorder %s1740_s19, 63  ;;  %1885 = vmatprep.subr.mxu1 %v610_v0  ;;  %vm1529_vm4 = vcmask 1043459   ;;  %vm1531_vm5 = vcmask 1044484   ;;  %vm1533_vm6 = vcmask 1045509   ;;  %vm1535_vm7 = vcmask 1046534  }
   0xf   : > { %1820 = vmatpush3.msra.mxu0 %v610_v0  ;;  %1886 = vmatpush3.msra.mxu1 %v610_v0  ;;  %vm1537_vm8 = vcmask 1047559  }
  0x10   : > { %s2908_s19 = smov (!%p207_p3, %s1740_s19), 63 }
  0x11   : > { %s1741_s20 = sshll.u32 %s2908_s19, 3 }
  0x12   : > { %s2079_s23 = scalar_lea.vmem %s2825_s0, %s1741_s20  ;;  %s2139_s26 = scalar_lea.vmem %s2826_s1, %s1741_s20 }
  0x13   : > { %v578_v1 = vld [vmem:[%s2079_s23] sm:$0xff]  ;;  %v579_v2 = vld [vmem:[%s2079_s23 + $0x8] sm:$0xff]  ;;  %v580_v3 = vld [vmem:[%s2079_s23 + $0x10] sm:$0xff] }
  0x14   : > { %1821 = vmatprep.mubr.msk.f32.mxu0 %vm611_vm0, %v578_v1  ;;  %v598_v4 = vld [vmem:[%s2079_s23 + $0xa0] sm:$0xff]  ;;  %v599_v5 = vld [vmem:[%s2079_s23 + $0xa8] sm:$0xff]  ;;  %v581_v6 = vld [vmem:[%s2079_s23 + $0x18] sm:$0xff] }
  0x15   : > { %1822 = vmatmul.mubr.msk.f32.vlgmr.msra.gmra.mrb[0].mxu0 %vm611_vm0, %v579_v2  ;;  %1851 = vmatprep.mubr.msk.f32.mxu1 %vm611_vm0, %v598_v4  ;;  %v600_v7 = vld [vmem:[%s2079_s23 + $0xb0] sm:$0xff]  ;;  %v582_v8 = vld [vmem:[%s2079_s23 + $0x20] sm:$0xff]  ;;  %v601_v9 = vld [vmem:[%s2079_s23 + $0xb8] sm:$0xff] }
  0x16   : > { %1824 = vmatprep.mubr.msk.f32.mxu0 %vm611_vm0, %v580_v3  ;;  %1852 = vmatmul.mubr.msk.f32.vlgmr.msra.gmra.mrb[0].mxu1 %vm611_vm0, %v599_v5  ;;  %v602_v10 = vld [vmem:[%s2079_s23 + $0xc0] sm:$0xff]  ;;  %v583_v11 = vld [vmem:[%s2079_s23 + $0x28] sm:$0xff]  ;;  %v584_v12 = vld [vmem:[%s2079_s23 + $0x30] sm:$0xff] }
  0x17   : > { %1854 = vmatprep.mubr.msk.f32.mxu1 %vm611_vm0, %v600_v7  ;;  %v603_v13 = vld [vmem:[%s2079_s23 + $0xc8] sm:$0xff]  ;;  %v604_v14 = vld [vmem:[%s2079_s23 + $0xd0] sm:$0xff]  ;;  %v585_v15 = vld [vmem:[%s2079_s23 + $0x38] sm:$0xff] }
  0x18   : > { %v586_v16 = vld [vmem:[%s2079_s23 + $0x40] sm:$0xff]  ;;  %v605_v17 = vld [vmem:[%s2079_s23 + $0xd8] sm:$0xff]  ;;  %v587_v19 = vld [vmem:[%s2079_s23 + $0x48] sm:$0xff] }
  0x19   : > { %1825 = vmatmul.mubr.msk.f32.gmra.mrb[2].mxu0 %vm611_vm0, %v581_v6  ;;  %v606_v18 = vld [vmem:[%s2079_s23 + $0xe0] sm:$0xff]  ;;  %v588_v20 = vld [vmem:[%s2079_s23 + $0x50] sm:$0xff]  ;;  %v607_v21 = vld [vmem:[%s2079_s23 + $0xe8] sm:$0xff] }
  0x1a   : > { %1827 = vmatprep.mubr.msk.f32.mxu0 %vm611_vm0, %v582_v8  ;;  %1855 = vmatmul.mubr.msk.f32.gmra.mrb[2].mxu1 %vm611_vm0, %v601_v9  ;;  %v608_v22 = vld [vmem:[%s2079_s23 + $0xf0] sm:$0xff]  ;;  %v589_v23 = vld [vmem:[%s2079_s23 + $0x58] sm:$0xff]  ;;  %v590_v24 = vld [vmem:[%s2079_s23 + $0x60] sm:$0xff] }
  0x1b   : > { %1857 = vmatprep.mubr.msk.f32.mxu1 %vm611_vm0, %v602_v10  ;;  %v609_v25 = vld [vmem:[%s2079_s23 + $0xf8] sm:$0xff]  ;;  %v591_v26 = vld [vmem:[%s2079_s23 + $0x68] sm:$0xff]  ;;  %v592_v27 = vld [vmem:[%s2079_s23 + $0x70] sm:$0xff] }
  0x1c   : > { %v593_v28 = vld [vmem:[%s2079_s23 + $0x78] sm:$0xff]  ;;  %v594_v29 = vld [vmem:[%s2079_s23 + $0x80] sm:$0xff]  ;;  %v226_v30 = vld [vmem:[%s2139_s26 + $0x8] sm:$0xff] }
  0x1d   : > { %1828 = vmatmul.mubr.msk.f32.gmra.mrb[4].mxu0 %vm611_vm0, %v583_v11  ;;  %v595_v31 = vld [vmem:[%s2079_s23 + $0x88] sm:$0xff]  ;;  %v596_v32 = vld [vmem:[%s2079_s23 + $0x90] sm:$0xff]  ;;  %v265_v33 = vsel %vm257_vm1, %v226_v30, -inf  ;;  %v597_v34 = vld [vmem:[%s2079_s23 + $0x98] sm:$0xff] }
  0x1e   : > { %1830 = vmatprep.mubr.msk.f32.mxu0 %vm611_vm0, %v584_v12  ;;  %1858 = vmatmul.mubr.msk.f32.gmra.mrb[4].mxu1 %vm611_vm0, %v603_v13  ;;  %v266_v35 = vrot.slane %v265_v33, 4  ;;  %v225_v39 = vld [vmem:[%s2139_s26] sm:$0xff]  ;;  %v228_v43 = vld [vmem:[%s2139_s26 + $0x18] sm:$0xff]  ;;  %v227_v46 = vld [vmem:[%s2139_s26 + $0x10] sm:$0xff] }
  0x1f   : > { %1860 = vmatprep.mubr.msk.f32.mxu1 %vm611_vm0, %v604_v14  ;;  %v258_v40 = vsel %vm257_vm1, %v225_v39, -inf  ;;  %v279_v45 = vsel %vm257_vm1, %v228_v43, -inf  ;;  %v272_v48 = vsel %vm257_vm1, %v227_v46, -inf  ;;  %v2161_v53 = vld [vmem:[%s2139_s26 + $0x28] sm:$0xff]  ;;  %v2166_v57 = vld [vmem:[%s2139_s26 + $0x20] sm:$0xff]  ;;  %v2171_v3 = vld [vmem:[%s2139_s26 + $0x38] sm:$0xff] }
  0x20   : > { %v267_v36 = vmax.f32 %v265_v33, %v266_v35  ;;  %v259_v41 = vrot.slane %v258_v40, 4  ;;  %v280_v47 = vrot.slane %v279_v45, 4  ;;  %v273_v50 = vrot.slane %v272_v48, 4  ;;  %v2176_v8 = vld [vmem:[%s2139_s26 + $0x30] sm:$0xff]  ;;  %v2186_v33 = vld [vmem:[%s2139_s26 + $0x40] sm:$0xff] }
  0x21   : > { %1831 = vmatmul.mubr.msk.f32.gmra.mrb[6].mxu0 %vm611_vm0, %v585_v15  ;;  %v293_v56 = vsel %vm257_vm1, %v2161_v53, -inf  ;;  %v286_v60 = vsel %vm257_vm1, %v2166_v57, -inf  ;;  %v307_v7 = vsel %vm257_vm1, %v2171_v3, -inf  ;;  %v300_v12 = vsel %vm257_vm1, %v2176_v8, -inf }
  0x22   : > { %1833 = vmatprep.mubr.msk.f32.mxu0 %vm611_vm0, %v586_v16  ;;  %1861 = vmatmul.mubr.msk.f32.gmra.mrb[6].mxu1 %vm611_vm0, %v605_v17  ;;  %v268_v37 = vrot.slane %v267_v36, 2  ;;  %v260_v44 = vmax.f32 %v258_v40, %v259_v41  ;;  %v281_v52 = vmax.f32 %v279_v45, %v280_v47  ;;  %v274_v55 = vmax.f32 %v272_v48, %v273_v50  ;;  %v2197_v50 = vld [vmem:[%s2139_s26 + $0xa0] sm:$0xff] }
  0x23   : > { %1863 = vmatprep.mubr.msk.f32.mxu1 %vm611_vm0, %v606_v18  ;;  %v294_v59 = vrot.slane %v293_v56, 4  ;;  %v287_v63 = vrot.slane %v286_v60, 4  ;;  %v308_v11 = vrot.slane %v307_v7, 4  ;;  %v301_v16 = vrot.slane %v300_v12, 4 }
  0x24   : > { %v269_v38 = vmax.f32 %v267_v36, %v268_v37  ;;  %v261_v49 = vrot.slane %v260_v44, 2  ;;  %v282_v58 = vrot.slane %v281_v52, 2  ;;  %v275_v62 = vrot.slane %v274_v55, 2 }
  0x25   : > { %1834 = vmatmul.mubr.msk.f32.gmra.mrb[8].mxu0 %vm611_vm0, %v587_v19  ;;  %v295_v2 = vmax.f32 %v293_v56, %v294_v59  ;;  %v288_v6 = vmax.f32 %v286_v60, %v287_v63  ;;  %v309_v19 = vmax.f32 %v307_v7, %v308_v11  ;;  %v314_v36 = vsel %vm257_vm1, %v2186_v33, -inf }
  0x26   : > { %1836 = vmatprep.mubr.msk.f32.mxu0 %vm611_vm0, %v588_v20  ;;  %1864 = vmatmul.mubr.msk.f32.gmra.mrb[8].mxu1 %vm611_vm0, %v607_v21  ;;  %v270_v42 = vrot.slane %v269_v38, 1  ;;  %v262_v54 = vmax.f32 %v260_v44, %v261_v49  ;;  %v283_v1 = vmax.f32 %v281_v52, %v282_v58  ;;  %v276_v5 = vmax.f32 %v274_v55, %v275_v62 }
  0x27   : > { %1866 = vmatprep.mubr.msk.f32.mxu1 %vm611_vm0, %v608_v22  ;;  %v296_v10 = vrot.slane %v295_v2, 2  ;;  %v289_v15 = vrot.slane %v288_v6, 2  ;;  %v315_v40 = vrot.slane %v314_v36, 4 }
  0x28   : > { %v271_v51 = vmax.f32 %v269_v38, %v270_v42  ;;  %v263_v61 = vrot.slane %v262_v54, 1  ;;  %v284_v9 = vrot.slane %v283_v1, 1  ;;  %v277_v14 = vrot.slane %v276_v5, 1 }
  0x29   : > { %1837 = vmatmul.mubr.msk.f32.gmra.mrb[10].mxu0 %vm611_vm0, %v589_v23  ;;  %v297_v18 = vmax.f32 %v295_v2, %v296_v10  ;;  %v290_v22 = vmax.f32 %v288_v6, %v289_v15  ;;  %v302_v23 = vmax.f32 %v300_v12, %v301_v16  ;;  %v316_v47 = vmax.f32 %v314_v36, %v315_v40 }
  0x2a   : > { %1839 = vmatprep.mubr.msk.f32.mxu0 %vm611_vm0, %v590_v24  ;;  %1867 = vmatmul.mubr.msk.f32.gmra.mrb[10].mxu1 %vm611_vm0, %v609_v25  ;;  %v483_v0 = vsub.f32 %v226_v30, %v271_v51  ;;  %v264_v4 = vmax.f32 %v262_v54, %v263_v61  ;;  %v285_v17 = vmax.f32 %v283_v1, %v284_v9  ;;  %v2181_v24 = vld [vmem:[%s2139_s26 + $0x48] sm:$0xff] }
  0x2b   : > { %v278_v21 = vmax.f32 %v276_v5, %v277_v14  ;;  %v303_v30 = vrot.slane %v302_v23, 2  ;;  %v291_v35 = vrot.slane %v290_v22, 1  ;;  %v317_v56 = vrot.slane %v316_v47, 2 }
  0x2c   : > { %v482_v13 = vsub.f32 %v225_v39, %v264_v4  ;;  %v516_v20 = vmul.f32 1.442695, %v483_v0 }
  0x2d   : > { %1840 = vmatmul.mubr.msk.f32.gmra.mrb[12].mxu0 %vm611_vm0, %v591_v26  ;;  %v298_v26 = vrot.slane %v297_v18, 1  ;;  %v304_v39 = vmax.f32 %v302_v23, %v303_v30  ;;  %v292_v45 = vmax.f32 %v290_v22, %v291_v35  ;;  %v318_v2 = vmax.f32 %v316_v47, %v317_v56  ;;  %v2234_v47 = vld [vmem:[%s2139_s26 + $0x50] sm:$0xff] }
  0x2e   : > { %1842 = vmatprep.mubr.msk.f32.mxu0 %vm611_vm0, %v592_v27  ;;  %v514_v25 = vmul.f32 1.442695, %v482_v13  ;;  %v310_v27 = vrot.slane %v309_v19, 2  ;;  %1896 = vpow2.f32 %v516_v20 }
  0x2f   : > { %v305_v48 = vrot.slane %v304_v39, 1  ;;  %v486_v54 = vsub.f32 %v2166_v57, %v292_v45  ;;  %v319_v15 = vrot.slane %v318_v2, 1 }
  0x30   : > { %1898 = vpow2.f32 %v514_v25  ;;  %v311_v37 = vmax.f32 %v309_v19, %v310_v27 }
  0x31   : > { %1843 = vmatmul.mubr.msk.f32.gmra.mrb[14].mxu0 %vm611_vm0, %v593_v28  ;;  %v321_v28 = vsel %vm257_vm1, %v2181_v24, -inf  ;;  %v306_v60 = vmax.f32 %v304_v39, %v305_v48  ;;  %v522_v63 = vmul.f32 1.442695, %v486_v54  ;;  %v320_v25 = vmax.f32 %v318_v2, %v319_v15  ;;  %v2258_v15 = vld [vmem:[%s2139_s26 + $0xb0] sm:$0xff] }
  0x32   : > { %1845 = vmatprep.mubr.msk.f32.mxu0 %vm611_vm0, %v594_v29  ;;  %v485_v29 = vsub.f32 %v228_v43, %v285_v17  ;;  %v2191_v43 = vld [vmem:[%s2139_s26 + $0xa8] sm:$0xff] }
  0x33   : > { %v405_v49 = vsel %vm257_vm1, %v2191_v43, -inf  ;;  %v488_v6 = vsub.f32 %v2176_v8, %v306_v60 }
  0x34   : > { %v520_v38 = vmul.f32 1.442695, %v485_v29  ;;  %v406_v58 = vrot.slane %v405_v49, 4 }
  0x35   : > { %1846 = vmatmul.mubr.msk.f32.gmra.mrb[16].mxu0 %vm611_vm0, %v595_v31  ;;  %v484_v31 = vsub.f32 %v227_v46, %v278_v21  ;;  %v312_v46 = vrot.slane %v311_v37, 1  ;;  %v526_v17 = vmul.f32 1.442695, %v488_v6 }
  0x36   : > { %1848 = vmatprep.mubr.msk.f32.mxu0 %vm611_vm0, %v596_v32  ;;  %v322_v32 = vrot.slane %v321_v28, 4  ;;  %1900 = vpow2.f32 %v520_v38  ;;  %v407_v4 = vmax.f32 %v405_v49, %v406_v58 }
  0x37   : > { %v518_v41 = vmul.f32 1.442695, %v484_v31  ;;  %v313_v55 = vmax.f32 %v311_v37, %v312_v46  ;;  %v490_v37 = vsub.f32 %v2186_v33, %v320_v25 }
  0x38   : > { %v323_v42 = vmax.f32 %v321_v28, %v322_v32  ;;  %v2202_v59 = vpop.eup %1896  ;;  %v408_v16 = vrot.slane %v407_v4, 2 }
  0x39   : > { %1849 = vmatmul.mubr.msk.f32.gmra.mrb[18].mxu0 %vm611_vm0, %v597_v34  ;;  %v299_v34 = vmax.f32 %v297_v18, %v298_v26  ;;  %1902 = vpow2.f32 %v518_v41  ;;  %v1196_v1 = vsel %vm257_vm1, %v2202_v59, 0.0  ;;  %v489_v57 = vsub.f32 %v2171_v3, %v313_v55  ;;  %v2217_v3 = vld [vmem:[%s2139_s26 + $0x58] sm:$0xff] }
  0x3a   : > { %v324_v51 = vrot.slane %v323_v42, 2  ;;  %v2204_v61 = vpop.eup %1898  ;;  %v1197_v10 = vrot.slane %v1196_v1, 4  ;;  %v335_v22 = vsel %vm257_vm1, %v2217_v3, -inf  ;;  %v409_v26 = vmax.f32 %v407_v4, %v408_v16 }
  0x3b   : > { %v487_v44 = vsub.f32 %v2161_v53, %v299_v34  ;;  %v398_v53 = vsel %vm257_vm1, %v2197_v50, -inf  ;;  %v1189_v5 = vsel %vm257_vm1, %v2204_v61, 0.0  ;;  %v528_v14 = vmul.f32 1.442695, %v489_v57 }
  0x3c   : > { %v325_v62 = vmax.f32 %v323_v42, %v324_v51  ;;  %v399_v0 = vrot.slane %v398_v53, 4  ;;  %v1190_v13 = vrot.slane %v1189_v5, 4  ;;  %v1198_v8 = vadd.f32 %v1197_v10, %v1196_v1  ;;  %v1478_v10 = vld [vmem:[%s2828_s3 + $0x8] sm:$0xff] }
  0x3d   : > { %v524_v52 = vmul.f32 1.442695, %v487_v44  ;;  %v336_v31 = vrot.slane %v335_v22, 4  ;;  %v410_v38 = vrot.slane %v409_v26, 1  ;;  %v530_v51 = vmul.f32 1.442695, %v490_v37 }
  0x3e   : > { %v326_v7 = vrot.slane %v325_v62, 1  ;;  %v400_v11 = vmax.f32 %v398_v53, %v399_v0  ;;  %v1191_v23 = vadd.f32 %v1190_v13, %v1189_v5  ;;  %v1199_v32 = vrot.slane %v1198_v8, 2  ;;  %v2246_v5 = vld [vmem:[%s2139_s26 + $0xb8] sm:$0xff] }
  0x3f   : > { %1904 = vpow2.f32 %v524_v52  ;;  %v337_v45 = vmax.f32 %v335_v22, %v336_v31  ;;  %v411_v52 = vmax.f32 %v409_v26, %v410_v38  ;;  %v328_v53 = vsel %vm257_vm1, %v2234_v47, -inf }
  0x40   : > { %v2212_v9 = vpop.eup %1900  ;;  %1906 = vpow2.f32 %v522_v63  ;;  %v327_v19 = vmax.f32 %v325_v62, %v326_v7  ;;  %v401_v21 = vrot.slane %v400_v11, 2  ;;  %v1192_v35 = vrot.slane %v1191_v23, 2 }
  0x41   : > { %v1210_v18 = vsel %vm257_vm1, %v2212_v9, 0.0  ;;  %1908 = vpow2.f32 %v528_v14  ;;  %v1200_v46 = vadd.f32 %v1199_v32, %v1198_v8  ;;  %v338_v58 = vrot.slane %v337_v45, 2 }
  0x42   : > { %v1211_v28 = vrot.slane %v1210_v18, 4  ;;  %1910 = vpow2.f32 %v526_v17  ;;  %v491_v30 = vsub.f32 %v2181_v24, %v327_v19  ;;  %v402_v34 = vmax.f32 %v400_v11, %v401_v21  ;;  %v1480_v11 = vld [vmem:[%s2828_s3 + $0x18] sm:$0xff]  ;;  %v1479_v19 = vld [vmem:[%s2828_s3 + $0x10] sm:$0xff] }
  0x43   : > { %v2214_v12 = vpop.eup %1902  ;;  %v1193_v48 = vadd.f32 %v1192_v35, %v1191_v23  ;;  %v1201_v62 = vrot.slane %v1200_v46, 1  ;;  %v329_v1 = vrot.slane %v328_v53, 4  ;;  %v503_v2 = vsub.f32 %v2191_v43, %v411_v52 }
  0x44   : > { %v1203_v20 = vsel %vm257_vm1, %v2214_v12, 0.0  ;;  %v1212_v40 = vadd.f32 %v1211_v28, %v1210_v18  ;;  %v403_v41 = vrot.slane %v402_v34, 1  ;;  %v532_v44 = vmul.f32 1.442695, %v491_v30  ;;  %v1477_v18 = vld [vmem:[%s2828_s3] sm:$0xff] }
  0x45   : > { %v1204_v29 = vrot.slane %v1203_v20, 4  ;;  %v1194_v57 = vrot.slane %v1193_v48, 1  ;;  %v339_v4 = vmax.f32 %v337_v45, %v338_v58  ;;  %v330_v14 = vmax.f32 %v328_v53, %v329_v1 }
  0x46   : > { %v1213_v54 = vrot.slane %v1212_v40, 2  ;;  %v404_v33 = vmax.f32 %v402_v34, %v403_v41  ;;  %1912 = vpow2.f32 %v532_v44  ;;  %v1869_v17 = vpack.c.bf16 %v1480_v11, %v1478_v10  ;;  %v2275_v41 = vld [vmem:[%s2139_s26 + $0x68] sm:$0xff]  ;;  %v1483_v11 = vld [vmem:[%s2828_s3 + $0x30] sm:$0xff] }
  0x47   : > { %v1205_v42 = vadd.f32 %v1204_v29, %v1203_v20  ;;  %1914 = vpow2.f32 %v530_v51  ;;  %v340_v8 = vrot.slane %v339_v4, 1  ;;  %v1871_v21 = vpack.c.bf16 %v1479_v19, %v1477_v18 }
  0x48   : > { %v1214_v6 = vadd.f32 %v1213_v54, %v1212_v40  ;;  %v502_v13 = vsub.f32 %v2197_v50, %v404_v33  ;;  %v331_v22 = vrot.slane %v330_v14, 2  ;;  %v556_v25 = vmul.f32 1.442695, %v503_v2  ;;  %1870 = vmatprep.subr.bf16.mxu1 %v1869_v17  ;;  %v1484_v54 = vld [vmem:[%s2828_s3 + $0x38] sm:$0xff] }
  0x49   : > { %v2225_v27 = vpop.eup %1904  ;;  %v1206_v56 = vrot.slane %v1205_v42, 2  ;;  %v419_v26 = vsel %vm257_vm1, %v2246_v5, -inf  ;;  %v412_v28 = vsel %vm257_vm1, %v2258_v15, -inf  ;;  %1872 = vmatpush1.bf16.msra.mxu1 %v1871_v21  ;;  %v1202_v34 = vadd.f32 %v1201_v62, %v1200_v46  ;;  %v1482_v46 = vld [vmem:[%s2828_s3 + $0x28] sm:$0xff] }
  0x4a   : > { %v1224_v36 = vsel %vm257_vm1, %v2225_v27, 0.0  ;;  %v2231_v39 = vpop.eup %1906  ;;  %v554_v30 = vmul.f32 1.442695, %v502_v13  ;;  %v332_v31 = vmax.f32 %v330_v14, %v331_v22  ;;  %v413_v32 = vrot.slane %v412_v28, 4  ;;  %v2292_v62 = vld [vmem:[%s2139_s26 + $0xc8] sm:$0xff] }
  0x4b   : > { %v1225_v24 = vrot.slane %v1224_v36, 4  ;;  %v1217_v49 = vsel %vm257_vm1, %v2231_v39, 0.0  ;;  %v2238_v55 = vpop.eup %1908  ;;  %v2260_v43 = vadd.f32 %v1206_v56, %v1205_v42  ;;  %v341_v35 = vmax.f32 %v339_v4, %v340_v8 }
  0x4c   : > { %v2242_v60 = vpop.eup %1910  ;;  %v1218_v0 = vrot.slane %v1217_v49, 4  ;;  %v1238_v7 = vsel %vm257_vm1, %v2238_v55, 0.0  ;;  %v420_v40 = vrot.slane %v419_v26, 4  ;;  %1916 = vpow2.f32 %v556_v25 }
  0x4d   : > { %v1226_v63 = vadd.f32 %v1225_v24, %v1224_v36  ;;  %v1231_v16 = vsel %vm257_vm1, %v2242_v60, 0.0  ;;  %v1239_v23 = vrot.slane %v1238_v7, 4  ;;  %v1215_v36 = vrot.slane %v1214_v6, 1 }
  0x4e   : > { %v1219_v50 = vadd.f32 %v1218_v0, %v1217_v49  ;;  %v1232_v29 = vrot.slane %v1231_v16, 4  ;;  %v333_v45 = vrot.slane %v332_v31, 1  ;;  %v414_v24 = vmax.f32 %v412_v28, %v413_v32 }
  0x4f   : > { %v1227_v20 = vrot.slane %v1226_v63, 2  ;;  %v1240_v44 = vadd.f32 %v1239_v23, %v1238_v7  ;;  %v1195_v49 = vadd.f32 %v1194_v57, %v1193_v48  ;;  %v1208_v51 = vrot.slane %v2260_v43, 1 }
  0x50   : > { %v1220_v38 = vrot.slane %v1219_v50, 2  ;;  %v2277_v42 = vpop.eup %1912  ;;  %v1233_v52 = vadd.f32 %v1232_v29, %v1231_v16  ;;  %1918 = vpow2.f32 %v554_v30  ;;  %v493_v56 = vsub.f32 %v2217_v3, %v341_v35  ;;  %v1481_v3 = vld [vmem:[%s2828_s3 + $0x20] sm:$0xff] }
  0x51   : > { %v1228_v37 = vadd.f32 %v1227_v20, %v1226_v63  ;;  %v2286_v33 = vpop.eup %1914  ;;  %v1873_v58 = vpack.c.bf16 %v1484_v54, %v1482_v46  ;;  %v415_v53 = vrot.slane %v414_v24, 2  ;;  %v349_v48 = vsel %vm257_vm1, %v2275_v41, -inf  ;;  %v2307_v29 = vld [vmem:[%s2139_s26 + $0x60] sm:$0xff] }
  0x52   : > { %v1216_v63 = vadd.f32 %v1215_v36, %v1214_v6  ;;  %v1221_v0 = vadd.f32 %v1220_v38, %v1219_v50  ;;  %v1252_v1 = vsel %vm257_vm1, %v2277_v42, 0.0  ;;  %v421_v57 = vmax.f32 %v419_v26, %v420_v40  ;;  %v2316_v36 = vld [vmem:[%s2139_s26 + $0xc0] sm:$0xff] }
  0x53   : > { %v1229_v2 = vrot.slane %v1228_v37, 1  ;;  %v1241_v4 = vrot.slane %v1240_v44, 2  ;;  %v334_v7 = vmax.f32 %v332_v31, %v333_v45  ;;  %1874 = vmatprep.subr.bf16.mxu1 %v1873_v58  ;;  %v416_v10 = vmax.f32 %v414_v24, %v415_v53  ;;  %v1488_v45 = vld [vmem:[%s2828_s3 + $0x58] sm:$0xff] }
  0x54   : > { %v1234_v13 = vrot.slane %v1233_v52, 2  ;;  %v1875_v6 = vpack.c.bf16 %v1483_v11, %v1481_v3  ;;  %v350_v14 = vrot.slane %v349_v48, 4  ;;  %v433_v16 = vsel %vm257_vm1, %v2292_v62, -inf  ;;  %v1485_v3 = vld [vmem:[%s2828_s3 + $0x40] sm:$0xff]  ;;  %v1487_v11 = vld [vmem:[%s2828_s3 + $0x50] sm:$0xff] }
  0x55   : > { %v1253_v17 = vrot.slane %v1252_v1, 4  ;;  %v536_v18 = vmul.f32 1.442695, %v493_v56  ;;  %v417_v19 = vrot.slane %v416_v10, 1  ;;  %1920 = vrcp.f32 %v1202_v34 }
  0x56   : > { %v1209_v8 = vadd.f32 %v1208_v51, %v2260_v43  ;;  %v1222_v20 = vrot.slane %v1221_v0, 1  ;;  %v422_v50 = vrot.slane %v421_v57, 2  ;;  %1876 = vmatpush1.bf16.msra.mxu1 %v1875_v6  ;;  %1922 = vrcp.f32 %v1195_v49  ;;  %v2309_v30 = vpop.eup %1916 }
  0x57   : > { %v1230_v21 = vadd.f32 %v1229_v2, %v1228_v37  ;;  %v492_v22 = vsub.f32 %v2234_v47, %v334_v7  ;;  %v434_v23 = vrot.slane %v433_v16, 4  ;;  %1924 = vrcp.f32 %v1216_v63 }
  0x58   : > { %v1242_v25 = vadd.f32 %v1241_v4, %v1240_v44  ;;  %v1235_v26 = vadd.f32 %v1234_v13, %v1233_v52  ;;  %v351_v28 = vmax.f32 %v349_v48, %v350_v14  ;;  %v1254_v31 = vadd.f32 %v1253_v17, %v1252_v1  ;;  %v1486_v44 = vld [vmem:[%s2828_s3 + $0x48] sm:$0xff]  ;;  %v2345_v13 = vld [vmem:[%s2139_s26 + $0xd0] sm:$0xff] }
  0x59   : > { %v1245_v43 = vsel %vm257_vm1, %v2286_v33, 0.0  ;;  %1926 = vpow2.f32 %v536_v18  ;;  %v418_v32 = vmax.f32 %v416_v10, %v417_v19  ;;  %v1223_v47 = vadd.f32 %v1222_v20, %v1221_v0 }
  0x5a   : > { %v2313_v34 = vpop.eup %1918  ;;  %1928 = vrcp.f32 %v1209_v8  ;;  %v423_v35 = vmax.f32 %v421_v57, %v422_v50  ;;  %v534_v37 = vmul.f32 1.442695, %v492_v22  ;;  %v435_v38 = vmax.f32 %v433_v16, %v434_v23  ;;  %v2334_v57 = vld [vmem:[%s2139_s26 + $0xd8] sm:$0xff] }
  0x5b   : > { %1930 = vrcp.f32 %v1230_v21  ;;  %v342_v40 = vsel %vm257_vm1, %v2307_v29, -inf  ;;  %v1243_v24 = vrot.slane %v1242_v25, 1  ;;  %v1236_v49 = vrot.slane %v1235_v26, 1 }
  0x5c   : > { %v1246_v51 = vrot.slane %v1245_v43, 4  ;;  %v352_v52 = vrot.slane %v351_v28, 2  ;;  %v1255_v46 = vrot.slane %v1254_v31, 2  ;;  %v1336_v54 = vsel %vm257_vm1, %v2309_v30, 0.0 }
  0x5d   : > { %v504_v56 = vsub.f32 %v2258_v15, %v418_v32  ;;  %v426_v58 = vsel %vm257_vm1, %v2316_v36, -inf  ;;  %v1329_v53 = vsel %vm257_vm1, %v2313_v34, 0.0  ;;  %v424_v48 = vrot.slane %v423_v35, 1 }
  0x5e   : > { %v343_v63 = vrot.slane %v342_v40, 4  ;;  %v1877_v0 = vpack.c.bf16 %v1488_v45, %v1486_v44  ;;  %1932 = vpow2.f32 %v534_v37  ;;  %v436_v1 = vrot.slane %v435_v38, 2 }
  0x5f   : > { %v2336_v2 = vpop.eup %1920  ;;  %v1244_v4 = vadd.f32 %v1243_v24, %v1242_v25  ;;  %v1247_v7 = vadd.f32 %v1246_v51, %v1245_v43  ;;  %v353_v10 = vmax.f32 %v351_v28, %v352_v52  ;;  %v427_v15 = vrot.slane %v426_v58, 4 }
  0x60   : > { %1878 = vmatprep.subr.bf16.mxu1 %v1877_v0  ;;  %v2347_v6 = vpop.eup %1922  ;;  %v1256_v14 = vadd.f32 %v1255_v46, %v1254_v31  ;;  %v1337_v16 = vrot.slane %v1336_v54, 4  ;;  %v1330_v17 = vrot.slane %v1329_v53, 4  ;;  %v558_v18 = vmul.f32 1.442695, %v504_v56  ;;  %v2368_v46 = vld [vmem:[%s2139_s26 + $0xe8] sm:$0xff] }
  0x61   : > { %v2349_v19 = vpop.eup %1924  ;;  %1934 = vrcp.f32 %v1223_v47  ;;  %v1237_v8 = vadd.f32 %v1236_v49, %v1235_v26  ;;  %v425_v20 = vmax.f32 %v423_v35, %v424_v48  ;;  %v344_v50 = vmax.f32 %v342_v40, %v343_v63 }
  0x62   : > { %v437_v22 = vmax.f32 %v435_v38, %v436_v1  ;;  %v447_v23 = vsel %vm257_vm1, %v2334_v57, -inf  ;;  %v1879_v25 = vpack.c.bf16 %v1487_v11, %v1485_v3  ;;  %v440_v28 = vsel %vm257_vm1, %v2345_v13, -inf  ;;  %v2362_v38 = vld [vmem:[%s2139_s26 + $0x78] sm:$0xff] }
  0x63   : > { %v2351_v21 = vpop.eup %1926  ;;  %1936 = vrcp.f32 %v1244_v4  ;;  %v1248_v43 = vrot.slane %v1247_v7, 2  ;;  %v354_v32 = vrot.slane %v353_v10, 1  ;;  %v428_v26 = vmax.f32 %v426_v58, %v427_v15  ;;  %v2375_v15 = vld [vmem:[%s2139_s26 + $0x70] sm:$0xff] }
  0x64   : > { %2845 = vst [vmem:[#allocation2_spill] sm:$0xff] %v2351_v21  ;;  %v2357_v31 = vpop.eup %1928  ;;  %v1257_v35 = vrot.slane %v1256_v14, 1  ;;  %v1338_v37 = vadd.f32 %v1337_v16, %v1336_v54  ;;  %v1331_v40 = vadd.f32 %v1330_v17, %v1329_v53  ;;  %1938 = vpow2.f32 %v558_v18  ;;  %1880 = vmatpush1.bf16.msra.mxu1 %v1879_v25 }
  0x65   : > { %v2359_v47 = vpop.eup %1930  ;;  %v1266_v44 = vsel %vm257_vm1, %v2351_v21, 0.0  ;;  %v345_v45 = vrot.slane %v344_v50, 2  ;;  %v448_v24 = vrot.slane %v447_v23, 4  ;;  %v441_v49 = vrot.slane %v440_v28, 4  ;;  %v2396_v21 = vld [vmem:[%s2139_s26 + $0xe0] sm:$0xff] }
  0x66   : > { %2846 = vst [vmem:[#allocation3_spill] sm:$0xff] %v2359_v47  ;;  %1940 = vrcp.f32 %v1237_v8  ;;  %v505_v51 = vsub.f32 %v2246_v5, %v425_v20  ;;  %v438_v52 = vrot.slane %v437_v22, 1  ;;  %v1249_v56 = vadd.f32 %v1248_v43, %v1247_v7 }
  0x67   : > { %v355_v54 = vmax.f32 %v353_v10, %v354_v32  ;;  %v429_v58 = vrot.slane %v428_v26, 2  ;;  %v363_v53 = vsel %vm257_vm1, %v2362_v38, -inf  ;;  %v1258_v63 = vadd.f32 %v1257_v35, %v1256_v14 }
  0x68   : > { %v2372_v48 = vpop.eup %1932  ;;  %v1339_v0 = vrot.slane %v1338_v37, 2  ;;  %v1332_v1 = vrot.slane %v1331_v40, 2  ;;  %v1267_v4 = vrot.slane %v1266_v44, 4  ;;  %v346_v3 = vmax.f32 %v344_v50, %v345_v45 }
  0x69   : > { %2847 = vst [vmem:[#allocation4_spill] sm:$0xff] %v2372_v48  ;;  %v449_v11 = vmax.f32 %v447_v23, %v448_v24  ;;  %v442_v5 = vmax.f32 %v440_v28, %v441_v49  ;;  %v461_v16 = vsel %vm257_vm1, %v2368_v46, -inf  ;;  %v560_v7 = vmul.f32 1.442695, %v505_v51 }
  0x6a   : > { %v439_v10 = vmax.f32 %v437_v22, %v438_v52  ;;  %v364_v17 = vrot.slane %v363_v53, 4  ;;  %v462_v18 = vrot.slane %v461_v16, 4  ;;  %v1259_v14 = vsel %vm257_vm1, %v2372_v48, 0.0 }
  0x6b   : > { %v2379_v8 = vpop.eup %1934  ;;  %v495_v20 = vsub.f32 %v2275_v41, %v355_v54  ;;  %v430_v25 = vmax.f32 %v428_v26, %v429_v58  ;;  %v356_v50 = vsel %vm257_vm1, %v2375_v15, -inf  ;;  %v1250_v23 = vrot.slane %v1249_v56, 1 }
  0x6c   : > { %2848 = vst [vmem:[#allocation5_spill] sm:$0xff] %v2379_v8  ;;  %v1340_v28 = vadd.f32 %v1339_v0, %v1338_v37  ;;  %v1268_v43 = vadd.f32 %v1267_v4, %v1266_v44  ;;  %v463_v32 = vmax.f32 %v461_v16, %v462_v18  ;;  %v347_v22 = vrot.slane %v346_v3, 1 }
  0x6d   : > { %v2386_v35 = vpop.eup %1936  ;;  %v450_v45 = vrot.slane %v449_v11, 2  ;;  %v443_v24 = vrot.slane %v442_v5, 2  ;;  %v357_v49 = vrot.slane %v356_v50, 4  ;;  %v1333_v52 = vadd.f32 %v1332_v1, %v1331_v40 }
  0x6e   : > { %2849 = vst [vmem:[#allocation6_spill] sm:$0xff] %v2386_v35  ;;  %v2388_v51 = vpop.eup %1938  ;;  %v1260_v48 = vrot.slane %v1259_v14, 4  ;;  %1942 = vpow2.f32 %v560_v7  ;;  %v365_v41 = vmax.f32 %v363_v53, %v364_v17  ;;  %v540_v26 = vmul.f32 1.442695, %v495_v20 }
  0x6f   : > { %v507_v54 = vsub.f32 %v2292_v62, %v439_v10  ;;  %v431_v58 = vrot.slane %v430_v25, 1  ;;  %v464_v37 = vrot.slane %v463_v32, 2  ;;  %1944 = vrcp.f32 %v1258_v63 }
  0x70   : > { %v2391_v44 = vpop.eup %1940  ;;  %v1341_v0 = vrot.slane %v1340_v28, 1  ;;  %v1269_v4 = vrot.slane %v1268_v43, 2  ;;  %v358_v16 = vmax.f32 %v356_v50, %v357_v49  ;;  %v1343_v18 = vsel %vm257_vm1, %v2388_v51, 0.0 }
  0x71   : > { %2850 = vst [vmem:[#allocation7_spill] sm:$0xff] %v2391_v44  ;;  %v348_v35 = vmax.f32 %v346_v3, %v347_v22  ;;  %v451_v40 = vmax.f32 %v449_v11, %v450_v45  ;;  %v444_v1 = vmax.f32 %v442_v5, %v443_v24  ;;  %v1334_v53 = vrot.slane %v1333_v52, 1 }
  0x72   : > { %v1261_v7 = vadd.f32 %v1260_v48, %v1259_v14  ;;  %v366_v17 = vrot.slane %v365_v41, 2  ;;  %v359_v62 = vrot.slane %v358_v16, 2  ;;  %1946 = vpow2.f32 %v540_v26 }
  0x73   : > { %v564_v10 = vmul.f32 1.442695, %v507_v54  ;;  %v432_v20 = vmax.f32 %v430_v25, %v431_v58  ;;  %v465_v44 = vmax.f32 %v463_v32, %v464_v37  ;;  %v1251_v63 = vadd.f32 %v1250_v23, %v1249_v56  ;;  %v1490_v56 = vld [vmem:[%s2828_s3 + $0x68] sm:$0xff] }
  0x74   : > { %v1270_v8 = vadd.f32 %v1269_v4, %v1268_v43  ;;  %v1344_v47 = vrot.slane %v1343_v18, 4  ;;  %v454_v50 = vsel %vm257_vm1, %v2396_v21, -inf  ;;  %v1342_v49 = vadd.f32 %v1341_v0, %v1340_v28  ;;  %v2415_v4 = vld [vmem:[%s2139_s26 + $0xf8] sm:$0xff] }
  0x75   : > { %v494_v3 = vsub.f32 %v2307_v29, %v348_v35  ;;  %v452_v11 = vrot.slane %v451_v40, 1  ;;  %v445_v5 = vrot.slane %v444_v1, 1  ;;  %v1335_v22 = vadd.f32 %v1334_v53, %v1333_v52  ;;  %v1492_v29 = vld [vmem:[%s2828_s3 + $0x78] sm:$0xff] }
  0x76   : > { %v1262_v45 = vrot.slane %v1261_v7, 2  ;;  %v367_v48 = vmax.f32 %v365_v41, %v366_v17  ;;  %v360_v14 = vmax.f32 %v358_v16, %v359_v62  ;;  %1948 = vpow2.f32 %v564_v10  ;;  %v1491_v62 = vld [vmem:[%s2828_s3 + $0x70] sm:$0xff] }
  0x77   : > { %v506_v24 = vsub.f32 %v2316_v36, %v432_v20  ;;  %v466_v25 = vrot.slane %v465_v44, 1  ;;  %v455_v32 = vrot.slane %v454_v50, 4  ;;  %1950 = vrcp.f32 %v1251_v63  ;;  %v2430_v10 = vld [vmem:[%s2139_s26 + $0xf0] sm:$0xff] }
  0x78   : > { %v2408_v23 = vpop.eup %1942  ;;  %v1271_v28 = vrot.slane %v1270_v8, 1  ;;  %v1345_v43 = vadd.f32 %v1344_v47, %v1343_v18  ;;  %v361_v35 = vrot.slane %v360_v14, 1  ;;  %v538_v52 = vmul.f32 1.442695, %v494_v3 }
  0x79   : > { %v453_v41 = vmax.f32 %v451_v40, %v452_v11  ;;  %v446_v36 = vmax.f32 %v444_v1, %v445_v5  ;;  %v456_v26 = vmax.f32 %v454_v50, %v455_v32  ;;  %v2410_v54 = vpop.eup %1944  ;;  %1952 = vrcp.f32 %v1342_v49 }
  0x7a   : > { %2851 = vst [vmem:[#allocation8_spill] sm:$0xff] %v2410_v54  ;;  %v2412_v58 = vadd.f32 %v1262_v45, %v1261_v7  ;;  %v368_v37 = vrot.slane %v367_v48, 1  ;;  %v1881_v0 = vpack.c.bf16 %v1492_v29, %v1490_v56  ;;  %1954 = vrcp.f32 %v1335_v22  ;;  %v1489_v7 = vld [vmem:[%s2828_s3 + $0x60] sm:$0xff] }
  0x7b   : > { %v2419_v16 = vsel %vm257_vm1, %v2408_v23, 0.0  ;;  %v562_v47 = vmul.f32 1.442695, %v506_v24  ;;  %v467_v18 = vmax.f32 %v465_v44, %v466_v25  ;;  %v2421_v40 = vadd.f32 %v1271_v28, %v1270_v8  ;;  %v2453_v28 = vld [vmem:[%s2139_s26 + $0x80] sm:$0xff] }
  0x7c   : > { %v1346_v1 = vrot.slane %v1345_v43, 2  ;;  %v362_v53 = vmax.f32 %v360_v14, %v361_v35  ;;  %v457_v17 = vrot.slane %v456_v26, 2  ;;  %1882 = vmatprep.subr.bf16.mxu1 %v1881_v0  ;;  %v2432_v20 = vpop.eup %1946  ;;  %1956 = vpow2.f32 %v538_v52  ;;  %v2443_v14 = vld [vmem:[%s2139_s26 + $0x88] sm:$0xff] }
  0x7d   : > { %v509_v8 = vsub.f32 %v2334_v57, %v453_v41  ;;  %v508_v44 = vsub.f32 %v2345_v13, %v446_v36  ;;  %v475_v63 = vsel %vm257_vm1, %v2415_v4, -inf  ;;  %v1264_v50 = vrot.slane %v2412_v58, 1 }
  0x7e   : > { %v369_v49 = vmax.f32 %v367_v48, %v368_v37  ;;  %v458_v3 = vmax.f32 %v456_v26, %v457_v17  ;;  %v476_v11 = vrot.slane %v475_v63, 4  ;;  %1958 = vpow2.f32 %v562_v47 }
  0x7f   : > { %v511_v5 = vsub.f32 %v2368_v46, %v467_v18  ;;  %v1883_v22 = vpack.c.bf16 %v1491_v62, %v1489_v7  ;;  %v468_v45 = vsel %vm257_vm1, %v2430_v10, -inf  ;;  %v2445_v57 = vadd.f32 %v1346_v1, %v1345_v43 }
  0x80   : > { %v1280_v13 = vsel %vm257_vm1, %v2432_v20, 0.0  ;;  %v496_v24 = vsub.f32 %v2375_v15, %v362_v53  ;;  %v459_v48 = vrot.slane %v458_v3, 1  ;;  %v2450_v25 = vpop.eup %1948  ;;  %v568_v32 = vmul.f32 1.442695, %v509_v8 }
  0x81   : > { %v566_v56 = vmul.f32 1.442695, %v508_v44  ;;  %v477_v29 = vmax.f32 %v475_v63, %v476_v11  ;;  %1884 = vmatpush1.bf16.msra.mxu1 %v1883_v22  ;;  %v469_v46 = vrot.slane %v468_v45, 4  ;;  %v2455_v35 = vpop.eup %1950  ;;  %v497_v43 = vsub.f32 %v2362_v38, %v369_v49 }
  0x82   : > { %2852 = vst [vmem:[#allocation9_spill] sm:$0xff] %v2455_v35  ;;  %v460_v52 = vmax.f32 %v458_v3, %v459_v48  ;;  %v377_v41 = vsel %vm257_vm1, %v2443_v14, -inf  ;;  %v572_v36 = vmul.f32 1.442695, %v511_v5  ;;  %v2832_v0 = vmov 0.0  }
  0x83   : > { %v478_v15 = vrot.slane %v477_v29, 2  ;;  %v470_v26 = vmax.f32 %v468_v45, %v469_v46  ;;  %v378_v37 = vrot.slane %v377_v41, 4  ;;  %1632 = vmatprep.mubr.f32.mxu1 %v2832_v0  ;;  %v2461_v47 = vpop.eup %1952  ;;  %v1364_v18 = vsel %vm257_vm1, %v2450_v25, 0.0 }
  0x84   : > { %v542_v1 = vmul.f32 1.442695, %v496_v24  ;;  %v510_v53 = vsub.f32 %v2396_v21, %v460_v52  ;;  %v370_v38 = vsel %vm257_vm1, %v2453_v28, -inf  ;;  %v2468_v17 = vpop.eup %1954  ;;  %1960 = vpow2.f32 %v568_v32 }
  0x85   : > { %v479_v7 = vmax.f32 %v477_v29, %v478_v15  ;;  %v471_v62 = vrot.slane %v470_v26, 2  ;;  %v379_v8 = vmax.f32 %v377_v41, %v378_v37  ;;  %v1281_v44 = vrot.slane %v1280_v13, 4  ;;  %v2479_v41 = vld [vmem:[%s2139_s26 + $0x98] sm:$0xff] }
  0x86   : > { %1962 = vpow2.f32 %v566_v56  ;;  %v544_v63 = vmul.f32 1.442695, %v497_v43  ;;  %v371_v49 = vrot.slane %v370_v38, 4  ;;  %v2470_v3 = vpop.eup %1956  ;;  %v1365_v11 = vrot.slane %v1364_v18, 4 }
  0x87   : > { %2853 = vst [vmem:[#allocation10_spill] sm:$0xff] %v2470_v3  ;;  %1964 = vpow2.f32 %v572_v36  ;;  %v480_v5 = vrot.slane %v479_v7, 1  ;;  %v472_v21 = vmax.f32 %v470_v26, %v471_v62  ;;  %v570_v45 = vmul.f32 1.442695, %v510_v53 }
  0x88   : > { %1966 = vpow2.f32 %v542_v1  ;;  %v380_v24 = vrot.slane %v379_v8, 2  ;;  %v2473_v48 = vpop.eup %1958  ;;  %v1265_v32 = vadd.f32 %v1264_v50, %v2412_v58  ;;  %v1348_v56 = vrot.slane %v2445_v57, 1  ;;  %v2485_v1 = vld [vmem:[%s2139_s26 + $0x90] sm:$0xff]  ;;  %s1744_s26 = sshll.u32 %s1735_s16, 2 }
  0x89   : > { %2854 = vst [vmem:[#allocation11_spill] sm:$0xff] %v2473_v48  ;;  %1968 = vrcp.f32 %v2421_v40  ;;  %v481_v29 = vmax.f32 %v479_v7, %v480_v5  ;;  %v473_v46 = vrot.slane %v472_v21, 1  ;;  %v372_v52 = vmax.f32 %v370_v38, %v371_v49  ;;  %p219_p4 = scmp.lt.s32.totalorder %s1744_s26, 7 }
  0x8a   : > { %1970 = vpow2.f32 %v544_v63  ;;  %v381_v43 = vmax.f32 %v379_v8, %v380_v24  ;;  %v1282_v36 = vadd.f32 %v1281_v44, %v1280_v13  ;;  %v1366_v15 = vadd.f32 %v1365_v11, %v1364_v18 }
  0x8b   : > { %v1273_v26 = vsel %vm257_vm1, %v2470_v3, 0.0  ;;  %v513_v37 = vsub.f32 %v2415_v4, %v481_v29  ;;  %1972 = vpow2.f32 %v570_v45  ;;  %v474_v40 = vmax.f32 %v472_v21, %v473_v46  ;;  %s2910_s26 = smov (!%p219_p4, %s1744_s26), 7 }
  0x8c   : > { %v382_v58 = vrot.slane %v381_v43, 1  ;;  %v373_v50 = vrot.slane %v372_v52, 2  ;;  %1974 = vrcp.f32 %v1265_v32  ;;  %v1349_v53 = vadd.f32 %v1348_v56, %v2445_v57  ;;  %s1785_s10 = sshll.u32 %s2910_s26, 4 }
  0x8d   : > { %v576_v7 = vmul.f32 1.442695, %v513_v37  ;;  %v391_v38 = vsel %vm257_vm1, %v2479_v41, -inf  ;;  %v1274_v13 = vrot.slane %v1273_v26, 4  ;;  %v512_v18 = vsub.f32 %v2430_v10, %v474_v40  ;;  %s223_s13 = scalar_lea.vmem %s2829_s4, %s1785_s10 }
  0x8e   : > { %v383_v62 = vmax.f32 %v381_v43, %v382_v58  ;;  %v374_v8 = vmax.f32 %v372_v52, %v373_v50  ;;  %v2491_v44 = vpop.eup %1960  ;;  %v1283_v4 = vrot.slane %v1282_v36, 2  ;;  %v392_v63 = vrot.slane %v391_v38, 4 }
  0x8f   : > { %2855 = vst [vmem:[#allocation12_spill] sm:$0xff] %v2491_v44  ;;  %1976 = vpow2.f32 %v576_v7  ;;  %v384_v49 = vsel %vm257_vm1, %v2485_v1, -inf  ;;  %v1367_v57 = vrot.slane %v1366_v15, 2  ;;  %v574_v5 = vmul.f32 1.442695, %v512_v18 }
  0x90   : > { %v2495_v11 = vpop.eup %1962  ;;  %v499_v21 = vsub.f32 %v2443_v14, %v383_v62  ;;  %v375_v45 = vrot.slane %v374_v8, 1  ;;  %1978 = vrcp.f32 %v1349_v53  ;;  %v1357_v10 = vsel %vm257_vm1, %v2473_v48, 0.0 }
  0x91   : > { %2856 = vst [vmem:[#allocation13_spill] sm:$0xff] %v2495_v11  ;;  %v2498_v24 = vpop.eup %1964  ;;  %v393_v32 = vmax.f32 %v391_v38, %v392_v63  ;;  %v385_v56 = vrot.slane %v384_v49, 4  ;;  %v1275_v46 = vadd.f32 %v1274_v13, %v1273_v26  ;;  %1980 = vpow2.f32 %v574_v5 }
  0x92   : > { %2857 = vst [vmem:[#allocation14_spill] sm:$0xff] %v2498_v24  ;;  %v2502_v29 = vpop.eup %1966  ;;  %v548_v43 = vmul.f32 1.442695, %v499_v21  ;;  %v376_v52 = vmax.f32 %v374_v8, %v375_v45  ;;  %v1378_v14 = vsel %vm257_vm1, %v2491_v44, 0.0  ;;  %v1371_v40 = vsel %vm257_vm1, %v2495_v11, 0.0 }
  0x93   : > { %2858 = vst [vmem:[#allocation15_spill] sm:$0xff] %v2502_v29  ;;  %v2504_v37 = vpop.eup %1968  ;;  %v394_v58 = vrot.slane %v393_v32, 2  ;;  %v386_v50 = vmax.f32 %v384_v49, %v385_v56  ;;  %v1284_v7 = vadd.f32 %v1283_v4, %v1282_v36  ;;  %v1358_v38 = vrot.slane %v1357_v10, 4 }
  0x94   : > { %2859 = vst [vmem:[#allocation16_spill] sm:$0xff] %v2504_v37  ;;  %v2510_v53 = vpop.eup %1970  ;;  %1982 = vpow2.f32 %v548_v43  ;;  %v498_v26 = vsub.f32 %v2453_v28, %v376_v52  ;;  %v1392_v13 = vsel %vm257_vm1, %v2498_v24, 0.0  ;;  %v1287_v18 = vsel %vm257_vm1, %v2502_v29, 0.0 }
  0x95   : > { %2860 = vst [vmem:[#allocation17_spill] sm:$0xff] %v2510_v53  ;;  %v395_v62 = vmax.f32 %v393_v32, %v394_v58  ;;  %v387_v8 = vrot.slane %v386_v50, 2  ;;  %v2517_v63 = vpop.eup %1972  ;;  %v1368_v5 = vadd.f32 %v1367_v57, %v1366_v15  ;;  %v1379_v21 = vrot.slane %v1378_v14, 4 }
  0x96   : > { %2861 = vst [vmem:[#allocation18_spill] sm:$0xff] %v2517_v63  ;;  %v1372_v49 = vrot.slane %v1371_v40, 4  ;;  %v546_v45 = vmul.f32 1.442695, %v498_v26  ;;  %v2519_v56 = vpop.eup %1974  ;;  %v1276_v36 = vrot.slane %v1275_v46, 2  ;;  %v1294_v28 = vsel %vm257_vm1, %v2510_v53, 0.0 }
  0x97   : > { %2862 = vst [vmem:[#allocation19_spill] sm:$0xff] %v2519_v56  ;;  %v396_v4 = vrot.slane %v395_v62, 1  ;;  %v388_v43 = vmax.f32 %v386_v50, %v387_v8  ;;  %v1285_v52 = vrot.slane %v1284_v7, 1  ;;  %v1359_v0 = vadd.f32 %v1358_v38, %v1357_v10 }
  0x98   : > { %v1393_v22 = vrot.slane %v1392_v13, 4  ;;  %v1288_v29 = vrot.slane %v1287_v18, 4  ;;  %v1385_v15 = vsel %vm257_vm1, %v2517_v63, 0.0  ;;  %1984 = vpow2.f32 %v546_v45 }
  0x99   : > { %v2523_v32 = vpop.eup %1976  ;;  %v397_v57 = vmax.f32 %v395_v62, %v396_v4  ;;  %v389_v58 = vrot.slane %v388_v43, 1  ;;  %v1380_v26 = vadd.f32 %v1379_v21, %v1378_v14  ;;  %v1373_v24 = vadd.f32 %v1372_v49, %v1371_v40 }
  0x9a   : > { %2863 = vst [vmem:[#allocation20_spill] sm:$0xff] %v2523_v32  ;;  %v1295_v56 = vrot.slane %v1294_v28, 4  ;;  %v1406_v53 = vsel %vm257_vm1, %v2523_v32, 0.0  ;;  %v2529_v11 = vpop.eup %1978  ;;  %v1369_v50 = vrot.slane %v1368_v5, 1  ;;  %v1277_v10 = vadd.f32 %v1276_v36, %v1275_v46 }
  0x9b   : > { %2864 = vst [vmem:[#allocation21_spill] sm:$0xff] %v2529_v11  ;;  %v501_v38 = vsub.f32 %v2479_v41, %v397_v57  ;;  %v390_v8 = vmax.f32 %v388_v43, %v389_v58  ;;  %v2532_v44 = vpop.eup %1980  ;;  %v1360_v48 = vrot.slane %v1359_v0, 2  ;;  %v1394_v63 = vadd.f32 %v1393_v22, %v1392_v13 }
  0x9c   : > { %2865 = vst [vmem:[#allocation22_spill] sm:$0xff] %v2532_v44  ;;  %v1289_v45 = vadd.f32 %v1288_v29, %v1287_v18  ;;  %v1386_v62 = vrot.slane %v1385_v15, 4  ;;  %v1407_v4 = vrot.slane %v1406_v53, 4  ;;  %v1399_v14 = vsel %vm257_vm1, %v2532_v44, 0.0 }
  0x9d   : > { %v552_v40 = vmul.f32 1.442695, %v501_v38  ;;  %v500_v21 = vsub.f32 %v2485_v1, %v390_v8  ;;  %v1381_v32 = vrot.slane %v1380_v26, 2  ;;  %v1374_v46 = vrot.slane %v1373_v24, 2 }
  0x9e   : > { %v2537_v49 = vpop.eup %1982  ;;  %v1400_v36 = vrot.slane %v1399_v14, 4  ;;  %v1296_v41 = vadd.f32 %v1295_v56, %v1294_v28  ;;  %v2867_v29 = vrot.slane %v2419_v16, 4  ;;  %v1361_v18 = vadd.f32 %v1360_v48, %v1359_v0 }
  0x9f   : > { %2866 = vst [vmem:[#allocation23_spill] sm:$0xff] %v2537_v49  ;;  %v1308_v43 = vsel %vm257_vm1, %v2537_v49, 0.0  ;;  %1986 = vpow2.f32 %v552_v40  ;;  %v550_v22 = vmul.f32 1.442695, %v500_v21  ;;  %v1395_v57 = vrot.slane %v1394_v63, 2 }
  0xa0   : > { %v1352_v13 = vadd.f32 %v2867_v29, %v2419_v16  ;;  %v1387_v58 = vadd.f32 %v1386_v62, %v1385_v15  ;;  %v1309_v38 = vrot.slane %v1308_v43, 4  ;;  %v1286_v1 = vadd.f32 %v1285_v52, %v1284_v7 }
  0xa1   : > { %v1278_v8 = vrot.slane %v1277_v10, 1  ;;  %v1290_v44 = vrot.slane %v1289_v45, 2  ;;  %v1408_v11 = vadd.f32 %v1407_v4, %v1406_v53  ;;  %v1382_v37 = vadd.f32 %v1381_v32, %v1380_v26 }
  0xa2   : > { %v1401_v3 = vadd.f32 %v1400_v36, %v1399_v14  ;;  %1988 = vpow2.f32 %v550_v22  ;;  %v1297_v56 = vrot.slane %v1296_v41, 2  ;;  %v2544_v28 = vpop.eup %1984  ;;  %v1370_v40 = vadd.f32 %v1369_v50, %v1368_v5 }
  0xa3   : > { %v1375_v21 = vadd.f32 %v1374_v46, %v1373_v24  ;;  %v1310_v49 = vadd.f32 %v1309_v38, %v1308_v43  ;;  %v1353_v35 = vrot.slane %v1352_v13, 2  ;;  %v1362_v54 = vrot.slane %v1361_v18, 1 }
  0xa4   : > { %v1396_v16 = vadd.f32 %v1395_v57, %v1394_v63  ;;  %v1388_v0 = vrot.slane %v1387_v58, 2  ;;  %v1301_v48 = vsel %vm257_vm1, %v2544_v28, 0.0  ;;  %v1279_v7 = vadd.f32 %v1278_v8, %v1277_v10 }
  0xa5   : > { %v1291_v52 = vadd.f32 %v1290_v44, %v1289_v45  ;;  %v1302_v15 = vrot.slane %v1301_v48, 4  ;;  %v1409_v53 = vrot.slane %v1408_v11, 2  ;;  %1990 = vrcp.f32 %v1286_v1 }
  0xa6   : > { %v1383_v32 = vrot.slane %v1382_v37, 1  ;;  %v1402_v26 = vrot.slane %v1401_v3, 2  ;;  %v1298_v62 = vadd.f32 %v1297_v56, %v1296_v41  ;;  %v1376_v4 = vrot.slane %v1375_v21, 1 }
  0xa7   : > { %v1311_v14 = vrot.slane %v1310_v49, 2  ;;  %v1303_v5 = vadd.f32 %v1302_v15, %v1301_v48  ;;  %v1354_v24 = vadd.f32 %v1353_v35, %v1352_v13  ;;  %1992 = vrcp.f32 %v1370_v40 }
  0xa8   : > { %v1363_v50 = vadd.f32 %v1362_v54, %v1361_v18  ;;  %v1397_v46 = vrot.slane %v1396_v16, 1  ;;  %v1389_v63 = vadd.f32 %v1388_v0, %v1387_v58  ;;  %1994 = vrcp.f32 %v1279_v7 }
  0xa9   : > { %v2548_v36 = vpop.eup %1986  ;;  %v1292_v43 = vrot.slane %v1291_v52, 1  ;;  %v1304_v10 = vrot.slane %v1303_v5, 2  ;;  %v1410_v44 = vadd.f32 %v1409_v53, %v1408_v11  ;;  %v1384_v45 = vadd.f32 %v1383_v32, %v1382_v37 }
  0xaa   : > { %v1403_v22 = vadd.f32 %v1402_v26, %v1401_v3  ;;  %v1322_v29 = vsel %vm257_vm1, %v2548_v36, 0.0  ;;  %v1299_v41 = vrot.slane %v1298_v62, 1  ;;  %v1377_v57 = vadd.f32 %v1376_v4, %v1375_v21 }
  0xab   : > { %v1312_v38 = vadd.f32 %v1311_v14, %v1310_v49  ;;  %v1323_v1 = vrot.slane %v1322_v29, 4  ;;  %v1355_v35 = vrot.slane %v1354_v24, 1  ;;  %1996 = vrcp.f32 %v1363_v50 }
  0xac   : > { %v2552_v13 = vpop.eup %1988  ;;  %v1398_v54 = vadd.f32 %v1397_v46, %v1396_v16  ;;  %v1390_v18 = vrot.slane %v1389_v63, 1  ;;  %v1305_v58 = vadd.f32 %v1304_v10, %v1303_v5  ;;  %v1293_v8 = vadd.f32 %v1292_v43, %v1291_v52 }
  0xad   : > { %v1324_v56 = vadd.f32 %v1323_v1, %v1322_v29  ;;  %v1315_v11 = vsel %vm257_vm1, %v2552_v13, 0.0  ;;  %v1411_v3 = vrot.slane %v1410_v44, 1  ;;  %1998 = vrcp.f32 %v1384_v45 }
  0xae   : > { %v1404_v37 = vrot.slane %v1403_v22, 1  ;;  %v1316_v40 = vrot.slane %v1315_v11, 4  ;;  %v1300_v0 = vadd.f32 %v1299_v41, %v1298_v62  ;;  %2000 = vrcp.f32 %v1377_v57 }
  0xaf   : > { %v1313_v49 = vrot.slane %v1312_v38, 1  ;;  %v1325_v21 = vrot.slane %v1324_v56, 2  ;;  %v1356_v48 = vadd.f32 %v1355_v35, %v1354_v24  ;;  %v2556_v7 = vpop.eup %1990  ;;  %2002 = vrcp.f32 %v1398_v54 }
  0xb0   : > { %v1391_v16 = vadd.f32 %v1390_v18, %v1389_v63  ;;  %v1306_v15 = vrot.slane %v1305_v58, 1  ;;  %v1317_v53 = vadd.f32 %v1316_v40, %v1315_v11  ;;  %2004 = vrcp.f32 %v1293_v8 }
  0xb1   : > { %v1326_v52 = vadd.f32 %v1325_v21, %v1324_v56  ;;  %v1412_v32 = vadd.f32 %v1411_v3, %v1410_v44  ;;  %v2558_v26 = vpop.eup %1992  ;;  %v1405_v4 = vadd.f32 %v1404_v37, %v1403_v22  ;;  %2006 = vrcp.f32 %v1300_v0 }
  0xb2   : > { %v1318_v14 = vrot.slane %v1317_v53, 2  ;;  %v2560_v5 = vpop.eup %1994  ;;  %v1314_v62 = vadd.f32 %v1313_v49, %v1312_v38  ;;  %2008 = vrcp.f32 %v1356_v48  ;;  %v1307_v24 = vadd.f32 %v1306_v15, %v1305_v58 }
  0xb3   : > { %v1327_v50 = vrot.slane %v1326_v52, 1  ;;  %2010 = vrcp.f32 %v1391_v16 }
  0xb4   : > { %v1319_v46 = vadd.f32 %v1318_v14, %v1317_v53  ;;  %2012 = vrcp.f32 %v1412_v32 }
  0xb5   : > { %v1328_v63 = vadd.f32 %v1327_v50, %v1326_v52  ;;  %v2562_v10 = vpop.eup %1996  ;;  %2014 = vrcp.f32 %v1405_v4 }
  0xb6   : > { %v1320_v22 = vrot.slane %v1319_v46, 1  ;;  %2016 = vrcp.f32 %v1314_v62 }
  0xb7   : > { %v2566_v57 = vpop.eup %1998  ;;  %2018 = vrcp.f32 %v1307_v24 }
  0xb8   : > { %v1321_v54 = vadd.f32 %v1320_v22, %v1319_v46  ;;  %v2570_v18 = vpop.eup %2000  ;;  %2020 = vrcp.f32 %v1328_v63 }
  0xba   : > { %2022 = vrcp.f32 %v1321_v54 }
  0xe8   : > { %v1823_v43 = vpop.f32.mrb[0].mxu0 }
  0xe9   : > { %v934_v44 = vmul.f32 %v2202_v59, %v1823_v43  ;;  %v774_v45 = vpop.f32.mrb[1].mxu0  ;;  %v1853_v41 = vpop.f32.mrb[0].mxu1 }
  0xea   : > { %v933_v29 = vmul.f32 %v2204_v61, %v774_v45  ;;  %v954_v1 = vmul.f32 %v2309_v30, %v1853_v41  ;;  %v874_v35 = vpop.f32.mrb[1].mxu1  ;;  %v2574_v61 = vpop.eup %2002 }
  0xeb   : > { %v972_v38 = vsel %vm257_vm1, %v934_v44, 0.0  ;;  %v953_v56 = vmul.f32 %v2313_v34, %v874_v35  ;;  %v2578_v40 = vpop.eup %2004 }
  0xec   : > { %v973_v58 = vrot.slane %v972_v38, 4  ;;  %v965_v59 = vsel %vm257_vm1, %v933_v29, 0.0  ;;  %v1826_v8 = vpop.f32.mrb[2].mxu0  ;;  %v1112_v30 = vsel %vm257_vm1, %v954_v1, 0.0  ;;  %v2582_v34 = vpop.eup %2006 }
  0xed   : > { %v966_v11 = vrot.slane %v965_v59, 4  ;;  %v936_v3 = vmul.f32 %v2212_v9, %v1826_v8  ;;  %v784_v37 = vpop.f32.mrb[3].mxu0  ;;  %v1113_v21 = vrot.slane %v1112_v30, 4  ;;  %v1105_v48 = vsel %vm257_vm1, %v953_v56, 0.0  ;;  %v1856_v16 = vpop.f32.mrb[2].mxu1 }
  0xee   : > { %v974_v0 = vadd.f32 %v973_v58, %v972_v38  ;;  %v935_v49 = vmul.f32 %v2214_v12, %v784_v37  ;;  %v1106_v52 = vrot.slane %v1105_v48, 4  ;;  %v2586_v9 = vmul.f32 %v2408_v23, %v1856_v16  ;;  %v2588_v32 = vpop.f32.mrb[3].mxu1  ;;  %v2590_v4 = vpop.eup %2008 }
  0xef   : > { %v967_v15 = vadd.f32 %v966_v11, %v965_v59  ;;  %v986_v53 = vsel %vm257_vm1, %v936_v3, 0.0  ;;  %v2593_v24 = vadd.f32 %v1113_v21, %v1112_v30  ;;  %v2595_v46 = vpop.eup %2010 }
  0xf0   : > { %v975_v14 = vrot.slane %v974_v0, 2  ;;  %v987_v12 = vrot.slane %v986_v53, 4  ;;  %v979_v62 = vsel %vm257_vm1, %v935_v49, 0.0  ;;  %v1829_v50 = vpop.f32.mrb[4].mxu0  ;;  %v2598_v45 = vadd.f32 %v1106_v52, %v1105_v48  ;;  %v2600_v22 = vpop.eup %2012 }
  0xf1   : > { %v968_v43 = vrot.slane %v967_v15, 2  ;;  %v980_v63 = vrot.slane %v979_v62, 4  ;;  %v938_v44 = vmul.f32 %v2225_v27, %v1829_v50  ;;  %v794_v23 = vpop.f32.mrb[5].mxu0  ;;  %v2604_v35 = vpop.f32.mrb[4].mxu1 }
  0xf2   : > { %v976_v29 = vadd.f32 %v975_v14, %v974_v0  ;;  %v988_v41 = vadd.f32 %v987_v12, %v986_v53  ;;  %v937_v38 = vmul.f32 %v2231_v39, %v794_v23  ;;  %v2606_v54 = vpop.eup %2014  ;;  %v2610_v56 = vpop.f32.mrb[5].mxu1 }
  0xf3   : > { %2868 = vst [vmem:[#allocation24_spill] sm:$0xff] %v2606_v54  ;;  %v969_v58 = vadd.f32 %v968_v43, %v967_v15  ;;  %v981_v59 = vadd.f32 %v980_v63, %v979_v62  ;;  %v1000_v8 = vsel %vm257_vm1, %v938_v44, 0.0  ;;  %v2612_v11 = vpop.eup %2016 }
  0xf4   : > { %2869 = vst [vmem:[#allocation25_spill] sm:$0xff] %v2612_v11  ;;  %v977_v3 = vrot.slane %v976_v29, 1  ;;  %v989_v37 = vrot.slane %v988_v41, 2  ;;  %v1001_v39 = vrot.slane %v1000_v8, 4  ;;  %v993_v30 = vsel %vm257_vm1, %v937_v38, 0.0  ;;  %v1832_v0 = vpop.f32.mrb[6].mxu0  ;;  %v2615_v49 = vpop.eup %2018 }
  0xf5   : > { %2870 = vst [vmem:[#allocation26_spill] sm:$0xff] %v2615_v49  ;;  %v970_v21 = vrot.slane %v969_v58, 1  ;;  %v982_v48 = vrot.slane %v981_v59, 2  ;;  %v994_v16 = vrot.slane %v993_v30, 4  ;;  %v940_v15 = vmul.f32 %v2238_v55, %v1832_v0  ;;  %v804_v53 = vpop.f32.mrb[7].mxu0  ;;  %v2618_v52 = vpop.eup %2020 }
  0xf6   : > { %2871 = vst [vmem:[#allocation27_spill] sm:$0xff] %v2618_v52  ;;  %v978_v14 = vadd.f32 %v977_v3, %v976_v29  ;;  %v990_v12 = vadd.f32 %v989_v37, %v988_v41  ;;  %v1002_v62 = vadd.f32 %v1001_v39, %v1000_v8  ;;  %v939_v50 = vmul.f32 %v2242_v60, %v804_v53  ;;  %v2621_v43 = vpop.f32.mrb[6].mxu1  ;;  %v2623_v63 = vpop.eup %2022 }
  0xf7   : > { %2872 = vst [vmem:[#allocation28_spill] sm:$0xff] %v2623_v63  ;;  %v971_v44 = vadd.f32 %v970_v21, %v969_v58  ;;  %v983_v23 = vadd.f32 %v982_v48, %v981_v59  ;;  %v995_v38 = vadd.f32 %v994_v16, %v993_v30  ;;  %v1014_v27 = vsel %vm257_vm1, %v940_v15, 0.0  ;;  %v2626_v1 = vpop.f32.mrb[7].mxu1 }
  0xf8   : > { %v1446_v55 = vmul.f32 %v2336_v2, %v978_v14  ;;  %v991_v0 = vrot.slane %v990_v12, 1  ;;  %v1003_v52 = vrot.slane %v1002_v62, 2  ;;  %v1015_v29 = vrot.slane %v1014_v27, 4  ;;  %v1835_v41 = vpop.f32.mrb[8].mxu0 }
  0xf9   : > { %v1445_v60 = vmul.f32 %v2347_v6, %v971_v44  ;;  %v984_v8 = vrot.slane %v983_v23, 1  ;;  %v996_v3 = vrot.slane %v995_v38, 2  ;;  %v1007_v37 = vsel %vm257_vm1, %v939_v50, 0.0  ;;  %v814_v58 = vpop.f32.mrb[9].mxu0  ;;  %v2631_v48 = vpop.f32.mrb[8].mxu1 }
  0xfa   : > { %v992_v59 = vadd.f32 %v991_v0, %v990_v12  ;;  %v1004_v39 = vadd.f32 %v1003_v52, %v1002_v62  ;;  %v1016_v30 = vadd.f32 %v1015_v29, %v1014_v27  ;;  %v1008_v21 = vrot.slane %v1007_v37, 4  ;;  %v2635_v14 = vpop.f32.mrb[9].mxu1 }
  0xfb   : > { %v1526_v2 = vsel %vm1525_vm2, %v1446_v55, %v1445_v60  ;;  %v985_v16 = vadd.f32 %v984_v8, %v983_v23  ;;  %v997_v15 = vadd.f32 %v996_v3, %v995_v38  ;;  %v942_v53 = vmul.f32 %v2277_v42, %v1835_v41 }
  0xfc   : > { %v1448_v6 = vmul.f32 %v2349_v19, %v992_v59  ;;  %v1005_v44 = vrot.slane %v1004_v39, 1  ;;  %v1017_v63 = vrot.slane %v1016_v30, 2  ;;  %v1009_v50 = vadd.f32 %v1008_v21, %v1007_v37  ;;  %v1838_v49 = vpop.f32.mrb[10].mxu0  ;;  %v2874_v37 = vld [vmem:[#allocation3_spill] sm:$0xff] }
  0xfd   : > { %v1447_v52 = vmul.f32 %v2357_v31, %v985_v16  ;;  %v998_v27 = vrot.slane %v997_v15, 1  ;;  %v1028_v12 = vsel %vm257_vm1, %v942_v53, 0.0  ;;  %v941_v62 = vmul.f32 %v2286_v33, %v814_v58  ;;  %v824_v55 = vpop.f32.mrb[11].mxu0  ;;  %v2641_v29 = vpop.f32.mrb[10].mxu1 }
  0xfe   : > { %v1006_v23 = vadd.f32 %v1005_v44, %v1004_v39  ;;  %v1018_v38 = vadd.f32 %v1017_v63, %v1016_v30  ;;  %v1010_v0 = vrot.slane %v1009_v50, 2  ;;  %v1029_v42 = vrot.slane %v1028_v12, 4  ;;  %v2648_v3 = vpop.f32.mrb[11].mxu1  ;;  %v2875_v30 = vld [vmem:[#allocation5_spill] sm:$0xff] }
  0xff   : > { %v1528_v19 = vsel %vm1527_vm3, %v1447_v52, %v1526_v2  ;;  %v999_v41 = vadd.f32 %v998_v27, %v997_v15  ;;  %v1021_v60 = vsel %vm257_vm1, %v941_v62, 0.0  ;;  %v2873_v31 = vrot.slane %v2593_v24, 2  ;;  %v2877_v62 = vld [vmem:[#allocation2_spill] sm:$0xff] }
 0x100   : > { %v2651_v33 = vmul.f32 %v2874_v37, %v1006_v23  ;;  %v1530_v63 = vsel %vm1529_vm4, %v1448_v6, %v1528_v19  ;;  %v1019_v58 = vrot.slane %v1018_v38, 1  ;;  %v1011_v59 = vadd.f32 %v1010_v0, %v1009_v50  ;;  %v1841_v39 = vpop.f32.mrb[12].mxu0  ;;  %v2878_v19 = vld [vmem:[#allocation6_spill] sm:$0xff] }
 0x101   : > { %v1116_v8 = vadd.f32 %v2873_v31, %v2593_v24  ;;  %v1449_v21 = vmul.f32 %v2875_v30, %v999_v41  ;;  %v1030_v2 = vadd.f32 %v1029_v42, %v1028_v12  ;;  %v1022_v16 = vrot.slane %v1021_v60, 4  ;;  %v834_v53 = vpop.f32.mrb[13].mxu0 }
 0x102   : > { %v1020_v44 = vadd.f32 %v1019_v58, %v1018_v38  ;;  %v1012_v52 = vrot.slane %v1011_v59, 1  ;;  %v2876_v24 = vrot.slane %v2598_v45, 2  ;;  %v944_v23 = vmul.f32 %v2877_v62, %v1838_v49 }
 0x103   : > { %v1117_v15 = vrot.slane %v1116_v8, 1  ;;  %v2660_v31 = vsel %vm1531_vm5, %v1449_v21, %v1530_v63  ;;  %v1031_v6 = vrot.slane %v1030_v2, 2  ;;  %v1023_v50 = vadd.f32 %v1022_v16, %v1021_v60  ;;  %v2880_v21 = vld [vmem:[#allocation7_spill] sm:$0xff]  ;;  %v2881_v16 = vld [vmem:[#allocation4_spill] sm:$0xff] }
 0x104   : > { %v1109_v27 = vadd.f32 %v2876_v24, %v2598_v45  ;;  %v2663_v41 = vmul.f32 %v2878_v19, %v1020_v44  ;;  %v1013_v12 = vadd.f32 %v1012_v52, %v1011_v59  ;;  %v1042_v38 = vsel %vm257_vm1, %v944_v23, 0.0  ;;  %v2666_v37 = vpop.f32.mrb[14].mxu0 }
 0x105   : > { %v1118_v0 = vadd.f32 %v1117_v15, %v1116_v8  ;;  %v1032_v58 = vadd.f32 %v1031_v6, %v1030_v2  ;;  %v1024_v30 = vrot.slane %v1023_v50, 2  ;;  %v1043_v49 = vrot.slane %v1042_v38, 4  ;;  %v2671_v63 = vpop.f32.mrb[15].mxu0 }
 0x106   : > { %v1110_v42 = vrot.slane %v1109_v27, 1  ;;  %v2674_v60 = vmul.f32 %v2880_v21, %v1013_v12  ;;  %v943_v15 = vmul.f32 %v2881_v16, %v824_v55  ;;  %v1126_v59 = vsel %vm257_vm1, %v2586_v9, 0.0 }
 0x107   : > { %v2669_v45 = vmul.f32 %v2461_v47, %v1118_v0  ;;  %v1033_v44 = vrot.slane %v1032_v58, 1  ;;  %v1025_v52 = vadd.f32 %v1024_v30, %v1023_v50  ;;  %v1044_v24 = vadd.f32 %v1043_v49, %v1042_v38  ;;  %v2883_v30 = vld [vmem:[#allocation8_spill] sm:$0xff] }
 0x108   : > { %v1111_v8 = vadd.f32 %v1110_v42, %v1109_v27  ;;  %v1127_v2 = vrot.slane %v1126_v59, 4  ;;  %v1035_v47 = vsel %vm257_vm1, %v943_v15, 0.0  ;;  %v955_v23 = vmul.f32 %v2388_v51, %v2588_v32  ;;  %v2686_v27 = vpop.f32.mrb[16].mxu0  ;;  %v2884_v15 = vld [vmem:[#allocation9_spill] sm:$0xff] }
 0x109   : > { %2879 = vst [vmem:[#allocation3_spill] sm:$0xff] %v2669_v45  ;;  %v946_v6 = vmul.f32 %v2432_v20, %v1841_v39  ;;  %v1034_v55 = vadd.f32 %v1033_v44, %v1032_v58  ;;  %v1026_v0 = vrot.slane %v1025_v52, 1  ;;  %v1045_v19 = vrot.slane %v1044_v24, 2  ;;  %v2688_v12 = vpop.f32.mrb[17].mxu0 }
 0x10a   : > { %v2680_v62 = vmul.f32 %v2468_v17, %v1111_v8  ;;  %v1036_v9 = vrot.slane %v1035_v47, 4  ;;  %v1128_v50 = vadd.f32 %v1127_v2, %v1126_v59  ;;  %v1119_v42 = vsel %vm257_vm1, %v955_v23, 0.0 }
 0x10b   : > { %v1056_v17 = vsel %vm257_vm1, %v946_v6, 0.0  ;;  %v958_v38 = vmul.f32 %v2450_v25, %v2604_v35  ;;  %v1454_v51 = vmul.f32 %v2883_v30, %v1034_v55  ;;  %v1027_v32 = vadd.f32 %v1026_v0, %v1025_v52  ;;  %v2885_v52 = vld [vmem:[#allocation10_spill] sm:$0xff] }
 0x10c   : > { %2882 = vst [vmem:[#allocation5_spill] sm:$0xff] %v2680_v62  ;;  %v1046_v20 = vadd.f32 %v1045_v19, %v1044_v24  ;;  %v1037_v39 = vadd.f32 %v1036_v9, %v1035_v47  ;;  %v1129_v49 = vrot.slane %v1128_v50, 2  ;;  %v1120_v58 = vrot.slane %v1119_v42, 4  ;;  %v2696_v16 = vpop.f32.mrb[18].mxu0 }
 0x10d   : > { %v1057_v21 = vrot.slane %v1056_v17, 4  ;;  %v1140_v8 = vsel %vm257_vm1, %v958_v38, 0.0  ;;  %v1453_v59 = vmul.f32 %v2884_v15, %v1027_v32  ;;  %v2699_v6 = vpop.f32.mrb[19].mxu0  ;;  %v945_v24 = vmul.f32 %v2885_v52, %v834_v53  ;;  %v2886_v15 = vld [vmem:[#allocation16_spill] sm:$0xff] }
 0x10e   : > { %v1047_v44 = vrot.slane %v1046_v20, 1  ;;  %v1038_v2 = vrot.slane %v1037_v39, 2  ;;  %v1141_v23 = vrot.slane %v1140_v8, 4  ;;  %v1130_v25 = vadd.f32 %v1129_v49, %v1128_v50 }
 0x10f   : > { %v1121_v35 = vadd.f32 %v1120_v58, %v1119_v42  ;;  %v1058_v55 = vadd.f32 %v1057_v21, %v1056_v17  ;;  %v1539_v47 = vsel %vm1525_vm2, %v1454_v51, %v1453_v59  ;;  %v1049_v32 = vsel %vm257_vm1, %v945_v24, 0.0  ;;  %v2887_v51 = vld [vmem:[#allocation11_spill] sm:$0xff]  ;;  %v2888_v21 = vld [vmem:[#allocation12_spill] sm:$0xff] }
 0x110   : > { %v1048_v0 = vadd.f32 %v1047_v44, %v1046_v20  ;;  %v1039_v19 = vadd.f32 %v1038_v2, %v1037_v39  ;;  %v1142_v9 = vadd.f32 %v1141_v23, %v1140_v8  ;;  %v1131_v38 = vrot.slane %v1130_v25, 1  ;;  %v2889_v23 = vld [vmem:[#allocation13_spill] sm:$0xff] }
 0x111   : > { %v1122_v30 = vrot.slane %v1121_v35, 2  ;;  %v1059_v45 = vrot.slane %v1058_v55, 2  ;;  %v1050_v50 = vrot.slane %v1049_v32, 4  ;;  %v957_v20 = vmul.f32 %v2887_v51, %v2610_v56 }
 0x112   : > { %v2705_v62 = vmul.f32 %v2886_v15, %v1048_v0  ;;  %v1040_v11 = vrot.slane %v1039_v19, 1  ;;  %v1143_v54 = vrot.slane %v1142_v9, 2  ;;  %v2707_v42 = vadd.f32 %v1131_v38, %v1130_v25  ;;  %v2890_v25 = vld [vmem:[#allocation19_spill] sm:$0xff] }
 0x113   : > { %v1123_v17 = vadd.f32 %v1122_v30, %v1121_v35  ;;  %v1060_v53 = vadd.f32 %v1059_v45, %v1058_v55  ;;  %v1051_v58 = vadd.f32 %v1050_v50, %v1049_v32  ;;  %v960_v8 = vmul.f32 %v2888_v21, %v2621_v43  ;;  %v2891_v30 = vld [vmem:[#allocation21_spill] sm:$0xff] }
 0x114   : > { %v1041_v39 = vadd.f32 %v1040_v11, %v1039_v19  ;;  %v1144_v49 = vadd.f32 %v1143_v54, %v1142_v9  ;;  %v1133_v2 = vsel %vm257_vm1, %v957_v20, 0.0  ;;  %v959_v52 = vmul.f32 %v2889_v23, %v2626_v1  ;;  %v2892_v20 = vld [vmem:[#allocation17_spill] sm:$0xff]  ;;  %v2895_v23 = vld [vmem:[#allocation18_spill] sm:$0xff] }
 0x115   : > { %v1124_v59 = vrot.slane %v1123_v17, 1  ;;  %v1061_v44 = vrot.slane %v1060_v53, 1  ;;  %v1052_v45 = vrot.slane %v1051_v58, 2  ;;  %v1134_v55 = vrot.slane %v1133_v2, 4 }
 0x116   : > { %v1455_v24 = vmul.f32 %v2890_v25, %v1041_v39  ;;  %v1145_v35 = vrot.slane %v1144_v49, 1  ;;  %v1154_v54 = vsel %vm257_vm1, %v960_v8, 0.0  ;;  %v1147_v11 = vsel %vm257_vm1, %v959_v52, 0.0  ;;  %v2894_v8 = vld [vmem:[#allocation15_spill] sm:$0xff] }
 0x117   : > { %v1125_v0 = vadd.f32 %v1124_v59, %v1123_v17  ;;  %v1062_v56 = vadd.f32 %v1061_v44, %v1060_v53  ;;  %v1053_v9 = vadd.f32 %v1052_v45, %v1051_v58  ;;  %v1135_v38 = vadd.f32 %v1134_v55, %v1133_v2 }
 0x118   : > { %v2720_v43 = vsel %vm1527_vm3, %v1455_v24, %v1539_v47  ;;  %v1146_v19 = vadd.f32 %v1145_v35, %v1144_v49  ;;  %v1155_v15 = vrot.slane %v1154_v54, 4  ;;  %v1148_v50 = vrot.slane %v1147_v11, 4  ;;  %v2893_v49 = vld [vmem:[#allocation14_spill] sm:$0xff] }
 0x119   : > { %v2723_v32 = vmul.f32 %v2891_v30, %v1125_v0  ;;  %v2726_v1 = vmul.f32 %v2556_v7, %v1062_v56  ;;  %v1054_v53 = vrot.slane %v1053_v9, 1  ;;  %v1136_v51 = vrot.slane %v1135_v38, 2 }
 0x11a   : > { %v1470_v17 = vmul.f32 %v2558_v26, %v1146_v19  ;;  %v948_v39 = vmul.f32 %v2892_v20, %v2666_v37  ;;  %v1156_v47 = vadd.f32 %v1155_v15, %v1154_v54  ;;  %v1149_v21 = vadd.f32 %v1148_v50, %v1147_v11 }
 0x11b   : > { %v962_v58 = vmul.f32 %v2893_v49, %v2631_v48  ;;  %v947_v59 = vmul.f32 %v2894_v8, %v2671_v63  ;;  %v1055_v44 = vadd.f32 %v1054_v53, %v1053_v9  ;;  %v1137_v7 = vadd.f32 %v1136_v51, %v1135_v38  ;;  %v2896_v9 = vld [vmem:[#allocation20_spill] sm:$0xff] }
 0x11c   : > { %v1070_v2 = vsel %vm257_vm1, %v948_v39, 0.0  ;;  %v961_v26 = vmul.f32 %v2895_v23, %v2635_v14  ;;  %v1157_v52 = vrot.slane %v1156_v47, 2  ;;  %v1150_v25 = vrot.slane %v1149_v21, 2 }
 0x11d   : > { %v1071_v24 = vrot.slane %v1070_v2, 4  ;;  %v1168_v37 = vsel %vm257_vm1, %v962_v58, 0.0  ;;  %v2740_v35 = vmul.f32 %v2560_v5, %v1055_v44  ;;  %v1138_v45 = vrot.slane %v1137_v7, 1 }
 0x11e   : > { %v1169_v48 = vrot.slane %v1168_v37, 4  ;;  %v1063_v55 = vsel %vm257_vm1, %v947_v59, 0.0  ;;  %v1158_v63 = vadd.f32 %v1157_v52, %v1156_v47  ;;  %v1151_v0 = vadd.f32 %v1150_v25, %v1149_v21 }
 0x11f   : > { %v1072_v56 = vadd.f32 %v1071_v24, %v1070_v2  ;;  %v1064_v54 = vrot.slane %v1063_v55, 4  ;;  %v1139_v11 = vadd.f32 %v1138_v45, %v1137_v7  ;;  %v1161_v14 = vsel %vm257_vm1, %v961_v26, 0.0  ;;  %v2897_v24 = vld [vmem:[#allocation22_spill] sm:$0xff] }
 0x120   : > { %v1170_v19 = vadd.f32 %v1169_v48, %v1168_v37  ;;  %v964_v38 = vmul.f32 %v2896_v9, %v2641_v29  ;;  %v1159_v30 = vrot.slane %v1158_v63, 1  ;;  %v1152_v15 = vrot.slane %v1151_v0, 1 }
 0x121   : > { %v1073_v5 = vrot.slane %v1072_v56, 2  ;;  %v1065_v50 = vadd.f32 %v1064_v54, %v1063_v55  ;;  %v1469_v53 = vmul.f32 %v2562_v10, %v1139_v11  ;;  %v1162_v20 = vrot.slane %v1161_v14, 4  ;;  %v2898_v55 = vld [vmem:[#allocation23_spill] sm:$0xff] }
 0x122   : > { %v1171_v51 = vrot.slane %v1170_v19, 2  ;;  %v1182_v39 = vsel %vm257_vm1, %v964_v38, 0.0  ;;  %v1160_v47 = vadd.f32 %v1159_v30, %v1158_v63  ;;  %v1153_v21 = vadd.f32 %v1152_v15, %v1151_v0 }
 0x123   : > { %v1074_v49 = vadd.f32 %v1073_v5, %v1072_v56  ;;  %v1066_v58 = vrot.slane %v1065_v50, 2  ;;  %v1553_v8 = vsel %vm1525_vm2, %v1470_v17, %v1469_v53  ;;  %v1163_v29 = vadd.f32 %v1162_v20, %v1161_v14 }
 0x124   : > { %v1172_v59 = vadd.f32 %v1171_v51, %v1170_v19  ;;  %v1183_v44 = vrot.slane %v1182_v39, 4  ;;  %v1472_v7 = vmul.f32 %v2566_v57, %v1160_v47  ;;  %v1471_v2 = vmul.f32 %v2570_v18, %v1153_v21 }
 0x125   : > { %v1075_v10 = vrot.slane %v1074_v49, 1  ;;  %v1067_v23 = vadd.f32 %v1066_v58, %v1065_v50  ;;  %v1164_v52 = vrot.slane %v1163_v29, 2  ;;  %v963_v37 = vmul.f32 %v2897_v24, %v2648_v3 }
 0x126   : > { %v1173_v26 = vrot.slane %v1172_v59, 1  ;;  %v1184_v25 = vadd.f32 %v1183_v44, %v1182_v39  ;;  %v1554_v45 = vsel %vm1527_vm3, %v1471_v2, %v1553_v8  ;;  %v950_v63 = vmul.f32 %v2898_v55, %v2686_v27 }
 0x127   : > { %v1076_v48 = vadd.f32 %v1075_v10, %v1074_v49  ;;  %v1068_v17 = vrot.slane %v1067_v23, 1  ;;  %v1165_v56 = vadd.f32 %v1164_v52, %v1163_v29  ;;  %v1175_v18 = vsel %vm257_vm1, %v963_v37, 0.0 }
 0x128   : > { %v1174_v0 = vadd.f32 %v1173_v26, %v1172_v59  ;;  %v1185_v57 = vrot.slane %v1184_v25, 2  ;;  %v1176_v11 = vrot.slane %v1175_v18, 4  ;;  %v1084_v19 = vsel %vm257_vm1, %v950_v63, 0.0  ;;  %v2901_v63 = vld [vmem:[#allocation25_spill] sm:$0xff] }
 0x129   : > { %v1069_v54 = vadd.f32 %v1068_v17, %v1067_v23  ;;  %v949_v14 = vmul.f32 %v2544_v28, %v2688_v12  ;;  %v1166_v9 = vrot.slane %v1165_v56, 1  ;;  %v1085_v30 = vrot.slane %v1084_v19, 4 }
 0x12a   : > { %v1474_v3 = vmul.f32 %v2574_v61, %v1174_v0  ;;  %v1186_v38 = vadd.f32 %v1185_v57, %v1184_v25  ;;  %v1177_v27 = vadd.f32 %v1176_v11, %v1175_v18  ;;  %v1534_v50 = vsel %vm1533_vm6, %v2651_v33, %v2660_v31 }
 0x12b   : > { %v1459_v15 = vmul.f32 %v2578_v40, %v1069_v54  ;;  %v1077_v5 = vsel %vm257_vm1, %v949_v14, 0.0  ;;  %v1167_v53 = vadd.f32 %v1166_v9, %v1165_v56  ;;  %v1086_v20 = vadd.f32 %v1085_v30, %v1084_v19 }
 0x12c   : > { %v1187_v51 = vrot.slane %v1186_v38, 1  ;;  %v1078_v39 = vrot.slane %v1077_v5, 4  ;;  %v1178_v47 = vrot.slane %v1177_v27, 2  ;;  %v1536_v28 = vsel %vm1535_vm7, %v2674_v60, %v1534_v50 }
 0x12d   : > { %v952_v61 = vmul.f32 %v2548_v36, %v2696_v16  ;;  %v951_v40 = vmul.f32 %v2552_v13, %v2699_v6  ;;  %v1473_v12 = vmul.f32 %v2595_v46, %v1167_v53  ;;  %v1087_v49 = vrot.slane %v1086_v20, 2 }
 0x12e   : > { %v1188_v21 = vadd.f32 %v1187_v51, %v1186_v38  ;;  %v1079_v58 = vadd.f32 %v1078_v39, %v1077_v5  ;;  %v1179_v33 = vadd.f32 %v1178_v47, %v1177_v27  ;;  %v1538_v31 = vsel %vm1537_vm8, %v2663_v41, %v1536_v28  ;;  %v2904_v27 = vld [vmem:[#allocation28_spill] sm:$0xff]  ;;  %v2905_v51 = vld [vmem:[#allocation5_spill] sm:$0xff]  ;;  %v2906_v39 = vld [vmem:[#allocation3_spill] sm:$0xff] }
 0x12f   : > { %v1098_v8 = vsel %vm257_vm1, %v952_v61, 0.0  ;;  %v1091_v59 = vsel %vm257_vm1, %v951_v40, 0.0  ;;  %v1088_v60 = vadd.f32 %v1087_v49, %v1086_v20  ;;  %1779 = vmatmul.mubr.msk.f32.vlgmr.msra.gmra.mrb[12].mxu1 %vm257_vm1, %v1538_v31  ;;  %v2899_v6 = vmov 0.0  }
 0x130   : > { %v1080_v29 = vrot.slane %v1079_v58, 2  ;;  %v1099_v36 = vrot.slane %v1098_v8, 4  ;;  %v1092_v16 = vrot.slane %v1091_v59, 4  ;;  %v1180_v13 = vrot.slane %v1179_v33, 1  ;;  %1638 = vmatprep.mubr.f32.mxu1 %v2899_v6 }
 0x131   : > { %v1460_v46 = vmul.f32 %v2582_v34, %v1076_v48  ;;  %v1541_v44 = vsel %vm1529_vm4, %v2705_v62, %v2720_v43  ;;  %v1468_v41 = vmul.f32 %v2590_v4, %v2707_v42  ;;  %v1089_v2 = vrot.slane %v1088_v60, 1  ;;  %v2900_v62 = vld [vmem:[#allocation24_spill] sm:$0xff] }
 0x132   : > { %v1081_v10 = vadd.f32 %v1080_v29, %v1079_v58  ;;  %v1100_v23 = vadd.f32 %v1099_v36, %v1098_v8  ;;  %v1093_v26 = vadd.f32 %v1092_v16, %v1091_v59  ;;  %v1181_v52 = vadd.f32 %v1180_v13, %v1179_v33 }
 0x133   : > { %v1542_v25 = vsel %vm1531_vm5, %v2740_v35, %v1541_v44  ;;  %v1476_v24 = vmul.f32 %v2600_v22, %v1188_v21  ;;  %v1555_v37 = vsel %vm1529_vm4, %v1472_v7, %v1554_v45  ;;  %v1090_v34 = vadd.f32 %v1089_v2, %v1088_v60  ;;  %v2902_v45 = vld [vmem:[#allocation26_spill] sm:$0xff] }
 0x134   : > { %v1082_v48 = vrot.slane %v1081_v10, 1  ;;  %v1101_v17 = vrot.slane %v1100_v23, 2  ;;  %v1094_v55 = vrot.slane %v1093_v26, 2  ;;  %v1475_v43 = vmul.f32 %v2900_v62, %v1181_v52 }
 0x135   : > { %v1543_v4 = vsel %vm1533_vm6, %v2726_v1, %v1542_v25  ;;  %v1556_v42 = vsel %vm1531_vm5, %v1473_v12, %v1555_v37  ;;  %v1462_v0 = vmul.f32 %v2901_v63, %v1090_v34 }
 0x136   : > { %v1083_v56 = vadd.f32 %v1082_v48, %v1081_v10  ;;  %v1102_v57 = vadd.f32 %v1101_v17, %v1100_v23  ;;  %v1095_v35 = vadd.f32 %v1094_v55, %v1093_v26  ;;  %v1544_v22 = vsel %vm1535_vm7, %v1459_v15, %v1543_v4 }
 0x137   : > { %v1557_v7 = vsel %vm1533_vm6, %v1474_v3, %v1556_v42  ;;  %v1545_v19 = vsel %vm1537_vm8, %v1460_v46, %v1544_v22  ;;  %v2903_v3 = vld [vmem:[#allocation27_spill] sm:$0xff] }
 0x138   : > { %v1461_v18 = vmul.f32 %v2902_v45, %v1083_v56  ;;  %v1103_v54 = vrot.slane %v1102_v57, 1  ;;  %v1096_v11 = vrot.slane %v1095_v35, 1  ;;  %1780 = vmatmul.mubr.msk.f32.gmra.mrb[14].mxu1 %vm257_vm1, %v1545_v19  ;;  %v1558_v1 = vsel %vm1535_vm7, %v1475_v43, %v1557_v7 }
 0x139   : > { %1644 = vmatprep.mubr.f32.mxu1 %v2899_v6  ;;  %v1559_v30 = vsel %vm1537_vm8, %v1476_v24, %v1558_v1 }
 0x13a   : > { %v1546_v14 = vsel %vm1525_vm2, %v1462_v0, %v1461_v18  ;;  %v1104_v9 = vadd.f32 %v1103_v54, %v1102_v57  ;;  %v1097_v38 = vadd.f32 %v1096_v11, %v1095_v35 }
 0x13c   : > { %v1464_v15 = vmul.f32 %v2903_v3, %v1104_v9  ;;  %v1463_v5 = vmul.f32 %v2904_v27, %v1097_v38 }
 0x13e   : > { %v1547_v50 = vsel %vm1527_vm3, %v1463_v5, %v1546_v14 }
 0x13f   : > { %v1548_v53 = vsel %vm1529_vm4, %v1464_v15, %v1547_v50 }
 0x140   : > { %v1549_v20 = vsel %vm1531_vm5, %v2905_v51, %v1548_v53 }
 0x141   : > { %v1550_v47 = vsel %vm1533_vm6, %v2906_v39, %v1549_v20 }
 0x142   : > { %v1551_v28 = vsel %vm1535_vm7, %v2723_v32, %v1550_v47 }
 0x143   : > { %v1552_v61 = vsel %vm1537_vm8, %v1468_v41, %v1551_v28 }
 0x144   : > { %1781 = vmatmul.mubr.msk.f32.gmra.mrb[16].mxu1 %vm257_vm1, %v1552_v61 }
 0x145   : > { %1650 = vmatprep.mubr.f32.mxu1 %v2899_v6 }
 0x148   : > { %1782 = vmatmul.mubr.msk.f32.gmra.mrb[18].mxu1 %vm257_vm1, %v1559_v30 }
 0x202   : > { %v1634_v40 = vpop.f32.mrb[12].mxu1 }
 0x203   : > { %1657 = vst [vmem:[%s223_s13] sm:$0xff] %v1634_v40  ;;  %v1636_v32 = vpop.f32.mrb[13].mxu1 }
 0x204   : > { %1658 = vst [vmem:[%s223_s13 + $0x8] sm:$0xff] %v1636_v32 }
 0x20b   : > { %v1640_v12 = vpop.f32.mrb[14].mxu1 }
 0x20c   : > { %1659 = vst [vmem:[%s223_s13 + $0x10] sm:$0xff] %v1640_v12  ;;  %v1642_v21 = vpop.f32.mrb[15].mxu1 }
 0x20d   : > { %1660 = vst [vmem:[%s223_s13 + $0x18] sm:$0xff] %v1642_v21 }
 0x217   : > { %v1646_v49 = vpop.f32.mrb[16].mxu1 }
 0x218   : > { %1661 = vst [vmem:[%s223_s13 + $0x20] sm:$0xff] %v1646_v49  ;;  %v1648_v58 = vpop.f32.mrb[17].mxu1 }
 0x219   : > { %1662 = vst [vmem:[%s223_s13 + $0x28] sm:$0xff] %v1648_v58 }
 0x21b   : > { %v1652_v33 = vpop.f32.mrb[18].mxu1 }
 0x21c   : > { %1663 = vst [vmem:[%s223_s13 + $0x30] sm:$0xff] %v1652_v33  ;;  %v1654_v31 = vpop.f32.mrb[19].mxu1 }
 0x21d   : > { %1664 = vst [vmem:[%s223_s13 + $0x38] sm:$0xff] %v1654_v31 }
 0x21e PF: > { %s14_s15 = sadd.s32 1, %s2030_s15  }
 0x21f   : > { %p11_p5 = scmp.ge.s32.totalorder %s14_s15, 4  }
 0x221   :  { %13 = sbr.rel (!%p11_p5) target bundleno = 1 (0x1), region = 69 }

</bundles_post_ra>
